<compile_context>
chip_gen: v7x
topology: tpu7x:2x2x1
jax: 0.10.0
libtpu: 0.0.40
codegen_flags: <defaults>
</compile_context>

<pallas_src>
import functools

import jax
import jax.numpy as jnp
from jax import lax
from jax.experimental import pallas as pl
from jax.experimental.pallas import tpu as pltpu


def seq_classifier_kernel(tok_ref,   # (B*T,)  int32  SMEM   token ids, row-major (b, t)
                          p_ref,     # (V, 8H) f32    VMEM   emb_table @ W_ih + b (both dirs)
                          whh_ref,   # (2H,8H) bf16   VMEM   block-diag recurrent weights
                          wc_ref,    # (2H,128) bf16  VMEM   LN-affine+classifier folded
                          bc_ref,    # (1, 128) f32   VMEM   folded bias
                          out_ref,   # (B_pad, 128) f32
                          gxc_ref,   # (T*B_pad, 8H) f32 VMEM scratch
                          *, T, B, B_pad, H):
    f32, bf16 = jnp.float32, jnp.bfloat16
    H2, H8 = 2 * H, 8 * H

    # ---- loop-invariant lane constants (built once, outside the recurrence) ----
    lane1 = lax.broadcasted_iota(jnp.int32, (1, H8), 1)
    fwd_mask = (lane1 % H2) < H                     # fwd-direction lanes of each gate pair
    lane = lax.broadcasted_iota(jnp.int32, (B_pad, H8), 1)
    is_g = lane >= 3 * H2                           # cell-candidate (tanh) lanes; order [f,i,o,g]
    ab = jnp.where(is_g, 1.0, 0.5).astype(f32)      # sigmoid(x) = 0.5*tanh(0.5*x)+0.5
    gm = jnp.where(is_g, 0.0, 0.5).astype(f32)

    # ---- prologue: fused embedding gather + input projection + direction merge ----
    # gxc[i*B_pad+b] = [ P[tok[b,i]] on fwd lanes | P[tok[b,T-1-i]] on bwd lanes ]
    gxc_ref[...] = jnp.zeros((T * B_pad, H8), f32)  # padding rows (b >= B) stay zero
    for i in range(T):
        for b in range(B):
            row_f = p_ref[pl.ds(tok_ref[b * T + i], 1), :]             # (1, 8H)
            row_b = p_ref[pl.ds(tok_ref[b * T + (T - 1 - i)], 1), :]   # (1, 8H)
            gxc_ref[pl.ds(i * B_pad + b, 1), :] = jnp.where(fwd_mask, row_f, row_b)

    whh = whh_ref[...]                              # (2H, 8H) bf16, resident

    h = jnp.zeros((B_pad, H2), f32)                 # [h_fwd | h_bwd]
    c = jnp.zeros((B_pad, H2), f32)                 # [c_fwd | c_bwd]
    s = jnp.zeros((B_pad, H2), f32)                 # running sum of h over time

    # ---- fused fwd/bwd recurrence, fully unrolled (T tiny & static) ----
    for i in range(T):
        gx = gxc_ref[i * B_pad:(i + 1) * B_pad, :]  # (B_pad, 8H), tile-aligned read
        gates = gx + jnp.dot(h.astype(bf16), whh, preferred_element_type=f32)
        # single EUP pass: scaled tanh implements both sigmoid and tanh lanes
        act = ab * jnp.tanh(ab * gates) + gm
        f_g = act[:, 0 * H2:1 * H2]
        i_g = act[:, 1 * H2:2 * H2]
        o_g = act[:, 2 * H2:3 * H2]
        g_g = act[:, 3 * H2:4 * H2]
        c = f_g * c + i_g * g_g
        h = o_g * jnp.tanh(c)
        s = s + h

    # ---- mean over time, LayerNorm normalize (affine folded into classifier) ----
    mean_h = s * (1.0 / T)                          # [mean_fwd | mean_bwd]
    mu = jnp.mean(mean_h, axis=-1, keepdims=True)
    var = jnp.mean((mean_h - mu) ** 2, axis=-1, keepdims=True)
    xhat = (mean_h - mu) * lax.rsqrt(var + 1e-5)

    # ---- folded classifier: (LN affine) . Linear(2H->H) . Linear(H->C_pad) ----
    out_ref[...] = jnp.dot(xhat.astype(bf16), wc_ref[...],
                           preferred_element_type=f32) + bc_ref[...]


def seq_classifier_forward(tokens, params, *, hidden_size, num_class):
    H, C = hidden_size, num_class
    H2, H8 = 2 * H, 8 * H
    C_PAD = 128                                     # lane-dense output padding
    B_PAD = 8                                       # sublane-dense batch padding

    V, E = params["emb_table"].shape
    B, T = tokens.shape
    hi = lax.Precision.HIGHEST

    # ---- pack LSTM weights: gate order [f, i, o, g], direction-minor lanes ----
    perm = jnp.array([1, 0, 3, 2])                  # PyTorch [i,f,g,o] -> [f,i,o,g]

    def pack_ih(w):                                 # (4H, E) -> (E, 4, H)
        return w.T.reshape(E, 4, H)[:, perm, :]

    def pack_hh(w):                                 # (4H, H) -> (H, 4, H)
        return w.T.reshape(H, 4, H)[:, perm, :]

    def pack_b(b):                                  # (4H,)   -> (4, H)
        return b.reshape(4, H)[perm, :]

    wih = jnp.stack([pack_ih(params["w_ih_f"]), pack_ih(params["w_ih_b"])],
                    axis=2).reshape(E, H8)                                # (E, 8H)
    z = jnp.zeros((H, 4, H), jnp.float32)
    whh = jnp.concatenate(
        [jnp.stack([pack_hh(params["w_hh_f"]), z], axis=2).reshape(H, H8),
         jnp.stack([z, pack_hh(params["w_hh_b"])], axis=2).reshape(H, H8)],
        axis=0).astype(jnp.bfloat16)                                      # (2H, 8H)
    b_all = jnp.stack([pack_b(params["b_ih_f"] + params["b_hh_f"]),
                       pack_b(params["b_ih_b"] + params["b_hh_b"])],
                      axis=1).reshape(1, H8)                              # (1, 8H)

    # ---- fused embedding + input projection table (amortized across calls) ----
    p_table = (jnp.dot(params["emb_table"], wih, precision=hi) + b_all
               ).astype(jnp.float32)                                      # (V, 8H)

    # ---- eval-mode fold: LN affine + Linear(2H->H) + Linear(H->C) -> one matmul
    # (valid only because dropout = identity and there is no nonlinearity between)
    w12 = jnp.dot(params["w1"].T, params["w2"].T, precision=hi)           # (2H, C)
    wc = params["ln_gamma"][:, None] * w12                                # (2H, C)
    bc = (jnp.dot(params["ln_beta"], w12, precision=hi)
          + jnp.dot(params["b1"], params["w2"].T, precision=hi)
          + params["b2"])                                                 # (C,)
    wc_pad = jnp.pad(wc, ((0, 0), (0, C_PAD - C))).astype(jnp.bfloat16)
    bc_pad = jnp.pad(bc.reshape(1, C),
                     ((0, 0), (0, C_PAD - C))).astype(jnp.float32)

    tok_flat = tokens.reshape(B * T).astype(jnp.int32)

    flops = int(2 * T * B_PAD * H2 * H8          # recurrent h @ W_hh
                + 2 * B_PAD * H2 * C_PAD)        # folded classifier matmul
    transcendentals = int(T * (B_PAD * H8 + B_PAD * H2))
    bytes_accessed = int(tok_flat.size * 4 + p_table.size * 4 + whh.size * 2
                         + wc_pad.size * 2 + bc_pad.size * 4 + B_PAD * C_PAD * 4)

    smem = pl.BlockSpec(memory_space=pltpu.MemorySpace.SMEM)
    vmem = pl.BlockSpec(memory_space=pltpu.MemorySpace.VMEM)

    # Single TensorCore, no grid: latency-bound at this size (do not split over
    # TCs on v7x).  TODO(synk): if T*B scales up, stream gxc with a grid over T
    # and size tiles for 64 MiB VMEM (v7x) with an explicit vmem_limit_bytes.
    out_padded = pl.pallas_call(
        functools.partial(seq_classifier_kernel, T=T, B=B, B_pad=B_PAD, H=H),
        out_shape=jax.ShapeDtypeStruct((B_PAD, C_PAD), jnp.float32),
        in_specs=[smem, vmem, vmem, vmem, vmem],
        out_specs=vmem,
        scratch_shapes=[pltpu.VMEM((T * B_PAD, H8), jnp.float32)],
        cost_estimate=pl.CostEstimate(flops=flops,
                                      transcendentals=transcendentals,
                                      bytes_accessed=bytes_accessed),
    )(tok_flat, p_table, whh, wc_pad, bc_pad)
    return out_padded[:B, :C]


def reference_forward(tokens, params, *, hidden_size, num_class):
    """Pure-JAX f32 reference with identical semantics (correctness check)."""
    H = hidden_size
    emb = params["emb_table"][tokens]              # (B, T, E)
    B, T, E = emb.shape
    xs = jnp.transpose(emb, (1, 0, 2))             # (T, B, E)

    def run_dir(wih, whh, bih, bhh, seq):
        def step(carry, x_t):
            h, c = carry
            gates = x_t @ wih.T + h @ whh.T + bih + bhh
            i = jax.nn.sigmoid(gates[:, :H])
            f = jax.nn.sigmoid(gates[:, H:2 * H])
            g = jnp.tanh(gates[:, 2 * H:3 * H])
            o = jax.nn.sigmoid(gates[:, 3 * H:])
            c = f * c + i * g
            h = o * jnp.tanh(c)
            return (h, c), h
        init = (jnp.zeros((B, H)), jnp.zeros((B, H)))
        _, hs = lax.scan(step, init, seq)
        return hs                                  # (T, B, H)

    hs_f = run_dir(params["w_ih_f"], params["w_hh_f"],
                   params["b_ih_f"], params["b_hh_f"], xs)
    hs_b = run_dir(params["w_ih_b"], params["w_hh_b"],
                   params["b_ih_b"], params["b_hh_b"], xs[::-1])[::-1]
    out_seq = jnp.concatenate([hs_f, hs_b], axis=-1)   # (T, B, 2H)
    m = jnp.mean(out_seq, axis=0)                      # (B, 2H)
    mu = m.mean(-1, keepdims=True)
    var = ((m - mu) ** 2).mean(-1, keepdims=True)
    y = (m - mu) / jnp.sqrt(var + 1e-5) * params["ln_gamma"] + params["ln_beta"]
    h1 = y @ params["w1"].T + params["b1"]
    return h1 @ params["w2"].T + params["b2"]


if __name__ == "__main__":
    # Small, module-consistent config:
    #   embeddings: (vocab=50, embed_dim=32); hidden_size=32; num_layers=1;
    #   bidirectional=True; num_class=10; pad_idx=0; batch=2; seq_len=8.
    V, E, H, C = 50, 32, 32, 10
    B, T = 2, 8

    key = jax.random.PRNGKey(0)
    ks = jax.random.split(key, 16)
    params = {
        "emb_table": jax.random.normal(ks[0], (V, E), jnp.float32) * 0.5,
        # PyTorch-shaped LSTM params (weight_ih_l0 etc.), gate order [i, f, g, o]
        "w_ih_f": jax.random.normal(ks[1], (4 * H, E), jnp.float32) * 0.1,
        "w_hh_f": jax.random.normal(ks[2], (4 * H, H), jnp.float32) * 0.1,
        "b_ih_f": jax.random.normal(ks[3], (4 * H,), jnp.float32) * 0.1,
        "b_hh_f": jax.random.normal(ks[4], (4 * H,), jnp.float32) * 0.1,
        "w_ih_b": jax.random.normal(ks[5], (4 * H, E), jnp.float32) * 0.1,
        "w_hh_b": jax.random.normal(ks[6], (4 * H, H), jnp.float32) * 0.1,
        "b_ih_b": jax.random.normal(ks[7], (4 * H,), jnp.float32) * 0.1,
        "b_hh_b": jax.random.normal(ks[8], (4 * H,), jnp.float32) * 0.1,
        "ln_gamma": 1.0 + 0.1 * jax.random.normal(ks[9], (2 * H,), jnp.float32),
        "ln_beta": 0.1 * jax.random.normal(ks[10], (2 * H,), jnp.float32),
        "w1": jax.random.normal(ks[11], (H, 2 * H), jnp.float32) * 0.1,
        "b1": jax.random.normal(ks[12], (H,), jnp.float32) * 0.1,
        "w2": jax.random.normal(ks[13], (C, H), jnp.float32) * 0.1,
        "b2": jax.random.normal(ks[14], (C,), jnp.float32) * 0.1,
    }
    tokens = jax.random.randint(ks[15], (B, T), 0, V)   # (B, T) int ids

    fwd = jax.jit(functools.partial(seq_classifier_forward,
                                    hidden_size=H, num_class=C))
    logits = jax.block_until_ready(fwd(tokens, params))

    ref = jax.block_until_ready(
        reference_forward(tokens, params, hidden_size=H, num_class=C))
    assert logits.shape == (B, C)
    assert jnp.allclose(logits, ref, atol=5e-2, rtol=5e-2), (
        f"max abs diff {float(jnp.max(jnp.abs(logits - ref)))}")

    print("KERNEL_OK")
</pallas_src>

<mosaic_0001>
module attributes {stable_mosaic.version = 11 : i64} {
  func.func @seq_classifier_kernel(%arg0: memref<16xi32, #tpu.memory_space<smem>>, %arg1: memref<50x256xf32, #tpu.memory_space<vmem>>, %arg2: memref<64x256xbf16, #tpu.memory_space<vmem>>, %arg3: memref<64x128xbf16, #tpu.memory_space<vmem>>, %arg4: memref<1x128xf32, #tpu.memory_space<vmem>>, %arg5: memref<8x128xf32, #tpu.memory_space<vmem>>, %arg6: memref<64x256xf32, #tpu.memory_space<vmem>>) attributes {dimension_semantics = [], scalar_prefetch = 0 : i64, scratch_operands = 1 : i64, tpu.core_type = #tpu.core_type<tc>} {
    %0 = tpu.iota {dimensions = array<i32: 1>} : vector<1x256xi32>
    %c64_i32 = arith.constant 64 : i32
    %c0_i32 = arith.constant 0 : i32
    %1 = arith.cmpi eq, %c64_i32, %c0_i32 : i32
    %c1_i32 = arith.constant 1 : i32
    %2 = arith.select %1, %c1_i32, %c64_i32 : i32
    %3 = vector.broadcast %2 : i32 to vector<1x256xi32>
    %4 = arith.remsi %0, %3 : vector<1x256xi32>
    %c0_i32_0 = arith.constant 0 : i32
    %5 = vector.broadcast %c0_i32_0 : i32 to vector<1x256xi32>
    %6 = arith.cmpi ne, %4, %5 : vector<1x256xi32>
    %c0_i32_1 = arith.constant 0 : i32
    %7 = vector.broadcast %c0_i32_1 : i32 to vector<1x256xi32>
    %8 = arith.cmpi slt, %4, %7 : vector<1x256xi32>
    %c0_i32_2 = arith.constant 0 : i32
    %9 = arith.cmpi slt, %2, %c0_i32_2 : i32
    %10 = vector.broadcast %9 : i1 to vector<1x256xi1>
    %11 = vector.broadcast %10 : vector<1x256xi1> to vector<1x256xi1>
    %12 = arith.xori %8, %11 : vector<1x256xi1>
    %13 = arith.andi %12, %6 : vector<1x256xi1>
    %14 = vector.broadcast %2 : i32 to vector<1x256xi32>
    %15 = arith.addi %4, %14 : vector<1x256xi32>
    %16 = arith.select %13, %15, %4 : vector<1x256xi1>, vector<1x256xi32>
    %c32_i32 = arith.constant 32 : i32
    %17 = vector.broadcast %c32_i32 : i32 to vector<1x256xi32>
    %18 = arith.cmpi slt, %16, %17 : vector<1x256xi32>
    %19 = tpu.iota {dimensions = array<i32: 1>} : vector<8x256xi32>
    %c192_i32 = arith.constant 192 : i32
    %20 = vector.broadcast %c192_i32 : i32 to vector<8x256xi32>
    %21 = arith.cmpi sge, %19, %20 : vector<8x256xi32>
    %cst = arith.constant 1.000000e+00 : f32
    %cst_3 = arith.constant 5.000000e-01 : f32
    %22 = vector.broadcast %cst : f32 to vector<8x256xf32>
    %23 = vector.broadcast %cst_3 : f32 to vector<8x256xf32>
    %24 = arith.select %21, %22, %23 : vector<8x256xi1>, vector<8x256xf32>
    %cst_4 = arith.constant 0.000000e+00 : f32
    %cst_5 = arith.constant 5.000000e-01 : f32
    %25 = vector.broadcast %cst_4 : f32 to vector<8x256xf32>
    %26 = vector.broadcast %cst_5 : f32 to vector<8x256xf32>
    %27 = arith.select %21, %25, %26 : vector<8x256xi1>, vector<8x256xf32>
    %cst_6 = arith.constant 0.000000e+00 : f32
    %28 = vector.broadcast %cst_6 : f32 to vector<64x256xf32>
    %c0 = arith.constant 0 : index
    %c0_7 = arith.constant 0 : index
    %29 = vector.load %arg6[%c0, %c0_7] : memref<64x256xf32, #tpu.memory_space<vmem>>, vector<64x256xf32>
    tpu.vector_store %arg6[%c0, %c0_7], %28 {strides = array<i32>} : memref<64x256xf32, #tpu.memory_space<vmem>>, vector<64x256xf32>,
    %c0_8 = arith.constant 0 : index
    %30 = memref.load %arg0[%c0_8] : memref<16xi32, #tpu.memory_space<smem>>
    %31 = arith.index_cast %30 : i32 to index
    %c0_9 = arith.constant 0 : index
    %32 = vector.load %arg1[%31, %c0_9] : memref<50x256xf32, #tpu.memory_space<vmem>>, vector<1x256xf32>
    %c7 = arith.constant 7 : index
    %33 = memref.load %arg0[%c7] : memref<16xi32, #tpu.memory_space<smem>>
    %34 = arith.index_cast %33 : i32 to index
    %c0_10 = arith.constant 0 : index
    %35 = vector.load %arg1[%34, %c0_10] : memref<50x256xf32, #tpu.memory_space<vmem>>, vector<1x256xf32>
    %36 = arith.select %18, %32, %35 : vector<1x256xi1>, vector<1x256xf32>
    %c0_11 = arith.constant 0 : index
    %c0_12 = arith.constant 0 : index
    %37 = vector.load %arg6[%c0_11, %c0_12] : memref<64x256xf32, #tpu.memory_space<vmem>>, vector<1x256xf32>
    tpu.vector_store %arg6[%c0_11, %c0_12], %36 {strides = array<i32>} : memref<64x256xf32, #tpu.memory_space<vmem>>, vector<1x256xf32>,
    %c8 = arith.constant 8 : index
    %38 = memref.load %arg0[%c8] : memref<16xi32, #tpu.memory_space<smem>>
    %39 = arith.index_cast %38 : i32 to index
    %c0_13 = arith.constant 0 : index
    %40 = vector.load %arg1[%39, %c0_13] : memref<50x256xf32, #tpu.memory_space<vmem>>, vector<1x256xf32>
    %c15 = arith.constant 15 : index
    %41 = memref.load %arg0[%c15] : memref<16xi32, #tpu.memory_space<smem>>
    %42 = arith.index_cast %41 : i32 to index
    %c0_14 = arith.constant 0 : index
    %43 = vector.load %arg1[%42, %c0_14] : memref<50x256xf32, #tpu.memory_space<vmem>>, vector<1x256xf32>
    %44 = arith.select %18, %40, %43 : vector<1x256xi1>, vector<1x256xf32>
    %c1 = arith.constant 1 : index
    %c0_15 = arith.constant 0 : index
    %45 = vector.load %arg6[%c1, %c0_15] : memref<64x256xf32, #tpu.memory_space<vmem>>, vector<1x256xf32>
    tpu.vector_store %arg6[%c1, %c0_15], %44 {strides = array<i32>} : memref<64x256xf32, #tpu.memory_space<vmem>>, vector<1x256xf32>,
    %c1_16 = arith.constant 1 : index
    %46 = memref.load %arg0[%c1_16] : memref<16xi32, #tpu.memory_space<smem>>
    %47 = arith.index_cast %46 : i32 to index
    %c0_17 = arith.constant 0 : index
    %48 = vector.load %arg1[%47, %c0_17] : memref<50x256xf32, #tpu.memory_space<vmem>>, vector<1x256xf32>
    %c6 = arith.constant 6 : index
    %49 = memref.load %arg0[%c6] : memref<16xi32, #tpu.memory_space<smem>>
    %50 = arith.index_cast %49 : i32 to index
    %c0_18 = arith.constant 0 : index
    %51 = vector.load %arg1[%50, %c0_18] : memref<50x256xf32, #tpu.memory_space<vmem>>, vector<1x256xf32>
    %52 = arith.select %18, %48, %51 : vector<1x256xi1>, vector<1x256xf32>
    %c8_19 = arith.constant 8 : index
    %c0_20 = arith.constant 0 : index
    %53 = vector.load %arg6[%c8_19, %c0_20] : memref<64x256xf32, #tpu.memory_space<vmem>>, vector<1x256xf32>
    tpu.vector_store %arg6[%c8_19, %c0_20], %52 {strides = array<i32>} : memref<64x256xf32, #tpu.memory_space<vmem>>, vector<1x256xf32>,
    %c9 = arith.constant 9 : index
    %54 = memref.load %arg0[%c9] : memref<16xi32, #tpu.memory_space<smem>>
    %55 = arith.index_cast %54 : i32 to index
    %c0_21 = arith.constant 0 : index
    %56 = vector.load %arg1[%55, %c0_21] : memref<50x256xf32, #tpu.memory_space<vmem>>, vector<1x256xf32>
    %c14 = arith.constant 14 : index
    %57 = memref.load %arg0[%c14] : memref<16xi32, #tpu.memory_space<smem>>
    %58 = arith.index_cast %57 : i32 to index
    %c0_22 = arith.constant 0 : index
    %59 = vector.load %arg1[%58, %c0_22] : memref<50x256xf32, #tpu.memory_space<vmem>>, vector<1x256xf32>
    %60 = arith.select %18, %56, %59 : vector<1x256xi1>, vector<1x256xf32>
    %c9_23 = arith.constant 9 : index
    %c0_24 = arith.constant 0 : index
    %61 = vector.load %arg6[%c9_23, %c0_24] : memref<64x256xf32, #tpu.memory_space<vmem>>, vector<1x256xf32>
    tpu.vector_store %arg6[%c9_23, %c0_24], %60 {strides = array<i32>} : memref<64x256xf32, #tpu.memory_space<vmem>>, vector<1x256xf32>,
    %c2 = arith.constant 2 : index
    %62 = memref.load %arg0[%c2] : memref<16xi32, #tpu.memory_space<smem>>
    %63 = arith.index_cast %62 : i32 to index
    %c0_25 = arith.constant 0 : index
    %64 = vector.load %arg1[%63, %c0_25] : memref<50x256xf32, #tpu.memory_space<vmem>>, vector<1x256xf32>
    %c5 = arith.constant 5 : index
    %65 = memref.load %arg0[%c5] : memref<16xi32, #tpu.memory_space<smem>>
    %66 = arith.index_cast %65 : i32 to index
    %c0_26 = arith.constant 0 : index
    %67 = vector.load %arg1[%66, %c0_26] : memref<50x256xf32, #tpu.memory_space<vmem>>, vector<1x256xf32>
    %68 = arith.select %18, %64, %67 : vector<1x256xi1>, vector<1x256xf32>
    %c16 = arith.constant 16 : index
    %c0_27 = arith.constant 0 : index
    %69 = vector.load %arg6[%c16, %c0_27] : memref<64x256xf32, #tpu.memory_space<vmem>>, vector<1x256xf32>
    tpu.vector_store %arg6[%c16, %c0_27], %68 {strides = array<i32>} : memref<64x256xf32, #tpu.memory_space<vmem>>, vector<1x256xf32>,
    %c10 = arith.constant 10 : index
    %70 = memref.load %arg0[%c10] : memref<16xi32, #tpu.memory_space<smem>>
    %71 = arith.index_cast %70 : i32 to index
    %c0_28 = arith.constant 0 : index
    %72 = vector.load %arg1[%71, %c0_28] : memref<50x256xf32, #tpu.memory_space<vmem>>, vector<1x256xf32>
    %c13 = arith.constant 13 : index
    %73 = memref.load %arg0[%c13] : memref<16xi32, #tpu.memory_space<smem>>
    %74 = arith.index_cast %73 : i32 to index
    %c0_29 = arith.constant 0 : index
    %75 = vector.load %arg1[%74, %c0_29] : memref<50x256xf32, #tpu.memory_space<vmem>>, vector<1x256xf32>
    %76 = arith.select %18, %72, %75 : vector<1x256xi1>, vector<1x256xf32>
    %c17 = arith.constant 17 : index
    %c0_30 = arith.constant 0 : index
    %77 = vector.load %arg6[%c17, %c0_30] : memref<64x256xf32, #tpu.memory_space<vmem>>, vector<1x256xf32>
    tpu.vector_store %arg6[%c17, %c0_30], %76 {strides = array<i32>} : memref<64x256xf32, #tpu.memory_space<vmem>>, vector<1x256xf32>,
    %c3 = arith.constant 3 : index
    %78 = memref.load %arg0[%c3] : memref<16xi32, #tpu.memory_space<smem>>
    %79 = arith.index_cast %78 : i32 to index
    %c0_31 = arith.constant 0 : index
    %80 = vector.load %arg1[%79, %c0_31] : memref<50x256xf32, #tpu.memory_space<vmem>>, vector<1x256xf32>
    %c4 = arith.constant 4 : index
    %81 = memref.load %arg0[%c4] : memref<16xi32, #tpu.memory_space<smem>>
    %82 = arith.index_cast %81 : i32 to index
    %c0_32 = arith.constant 0 : index
    %83 = vector.load %arg1[%82, %c0_32] : memref<50x256xf32, #tpu.memory_space<vmem>>, vector<1x256xf32>
    %84 = arith.select %18, %80, %83 : vector<1x256xi1>, vector<1x256xf32>
    %c24 = arith.constant 24 : index
    %c0_33 = arith.constant 0 : index
    %85 = vector.load %arg6[%c24, %c0_33] : memref<64x256xf32, #tpu.memory_space<vmem>>, vector<1x256xf32>
    tpu.vector_store %arg6[%c24, %c0_33], %84 {strides = array<i32>} : memref<64x256xf32, #tpu.memory_space<vmem>>, vector<1x256xf32>,
    %c11 = arith.constant 11 : index
    %86 = memref.load %arg0[%c11] : memref<16xi32, #tpu.memory_space<smem>>
    %87 = arith.index_cast %86 : i32 to index
    %c0_34 = arith.constant 0 : index
    %88 = vector.load %arg1[%87, %c0_34] : memref<50x256xf32, #tpu.memory_space<vmem>>, vector<1x256xf32>
    %c12 = arith.constant 12 : index
    %89 = memref.load %arg0[%c12] : memref<16xi32, #tpu.memory_space<smem>>
    %90 = arith.index_cast %89 : i32 to index
    %c0_35 = arith.constant 0 : index
    %91 = vector.load %arg1[%90, %c0_35] : memref<50x256xf32, #tpu.memory_space<vmem>>, vector<1x256xf32>
    %92 = arith.select %18, %88, %91 : vector<1x256xi1>, vector<1x256xf32>
    %c25 = arith.constant 25 : index
    %c0_36 = arith.constant 0 : index
    %93 = vector.load %arg6[%c25, %c0_36] : memref<64x256xf32, #tpu.memory_space<vmem>>, vector<1x256xf32>
    tpu.vector_store %arg6[%c25, %c0_36], %92 {strides = array<i32>} : memref<64x256xf32, #tpu.memory_space<vmem>>, vector<1x256xf32>,
    %c4_37 = arith.constant 4 : index
    %94 = memref.load %arg0[%c4_37] : memref<16xi32, #tpu.memory_space<smem>>
    %95 = arith.index_cast %94 : i32 to index
    %c0_38 = arith.constant 0 : index
    %96 = vector.load %arg1[%95, %c0_38] : memref<50x256xf32, #tpu.memory_space<vmem>>, vector<1x256xf32>
    %c3_39 = arith.constant 3 : index
    %97 = memref.load %arg0[%c3_39] : memref<16xi32, #tpu.memory_space<smem>>
    %98 = arith.index_cast %97 : i32 to index
    %c0_40 = arith.constant 0 : index
    %99 = vector.load %arg1[%98, %c0_40] : memref<50x256xf32, #tpu.memory_space<vmem>>, vector<1x256xf32>
    %100 = arith.select %18, %96, %99 : vector<1x256xi1>, vector<1x256xf32>
    %c32 = arith.constant 32 : index
    %c0_41 = arith.constant 0 : index
    %101 = vector.load %arg6[%c32, %c0_41] : memref<64x256xf32, #tpu.memory_space<vmem>>, vector<1x256xf32>
    tpu.vector_store %arg6[%c32, %c0_41], %100 {strides = array<i32>} : memref<64x256xf32, #tpu.memory_space<vmem>>, vector<1x256xf32>,
    %c12_42 = arith.constant 12 : index
    %102 = memref.load %arg0[%c12_42] : memref<16xi32, #tpu.memory_space<smem>>
    %103 = arith.index_cast %102 : i32 to index
    %c0_43 = arith.constant 0 : index
    %104 = vector.load %arg1[%103, %c0_43] : memref<50x256xf32, #tpu.memory_space<vmem>>, vector<1x256xf32>
    %c11_44 = arith.constant 11 : index
    %105 = memref.load %arg0[%c11_44] : memref<16xi32, #tpu.memory_space<smem>>
    %106 = arith.index_cast %105 : i32 to index
    %c0_45 = arith.constant 0 : index
    %107 = vector.load %arg1[%106, %c0_45] : memref<50x256xf32, #tpu.memory_space<vmem>>, vector<1x256xf32>
    %108 = arith.select %18, %104, %107 : vector<1x256xi1>, vector<1x256xf32>
    %c33 = arith.constant 33 : index
    %c0_46 = arith.constant 0 : index
    %109 = vector.load %arg6[%c33, %c0_46] : memref<64x256xf32, #tpu.memory_space<vmem>>, vector<1x256xf32>
    tpu.vector_store %arg6[%c33, %c0_46], %108 {strides = array<i32>} : memref<64x256xf32, #tpu.memory_space<vmem>>, vector<1x256xf32>,
    %c5_47 = arith.constant 5 : index
    %110 = memref.load %arg0[%c5_47] : memref<16xi32, #tpu.memory_space<smem>>
    %111 = arith.index_cast %110 : i32 to index
    %c0_48 = arith.constant 0 : index
    %112 = vector.load %arg1[%111, %c0_48] : memref<50x256xf32, #tpu.memory_space<vmem>>, vector<1x256xf32>
    %c2_49 = arith.constant 2 : index
    %113 = memref.load %arg0[%c2_49] : memref<16xi32, #tpu.memory_space<smem>>
    %114 = arith.index_cast %113 : i32 to index
    %c0_50 = arith.constant 0 : index
    %115 = vector.load %arg1[%114, %c0_50] : memref<50x256xf32, #tpu.memory_space<vmem>>, vector<1x256xf32>
    %116 = arith.select %18, %112, %115 : vector<1x256xi1>, vector<1x256xf32>
    %c40 = arith.constant 40 : index
    %c0_51 = arith.constant 0 : index
    %117 = vector.load %arg6[%c40, %c0_51] : memref<64x256xf32, #tpu.memory_space<vmem>>, vector<1x256xf32>
    tpu.vector_store %arg6[%c40, %c0_51], %116 {strides = array<i32>} : memref<64x256xf32, #tpu.memory_space<vmem>>, vector<1x256xf32>,
    %c13_52 = arith.constant 13 : index
    %118 = memref.load %arg0[%c13_52] : memref<16xi32, #tpu.memory_space<smem>>
    %119 = arith.index_cast %118 : i32 to index
    %c0_53 = arith.constant 0 : index
    %120 = vector.load %arg1[%119, %c0_53] : memref<50x256xf32, #tpu.memory_space<vmem>>, vector<1x256xf32>
    %c10_54 = arith.constant 10 : index
    %121 = memref.load %arg0[%c10_54] : memref<16xi32, #tpu.memory_space<smem>>
    %122 = arith.index_cast %121 : i32 to index
    %c0_55 = arith.constant 0 : index
    %123 = vector.load %arg1[%122, %c0_55] : memref<50x256xf32, #tpu.memory_space<vmem>>, vector<1x256xf32>
    %124 = arith.select %18, %120, %123 : vector<1x256xi1>, vector<1x256xf32>
    %c41 = arith.constant 41 : index
    %c0_56 = arith.constant 0 : index
    %125 = vector.load %arg6[%c41, %c0_56] : memref<64x256xf32, #tpu.memory_space<vmem>>, vector<1x256xf32>
    tpu.vector_store %arg6[%c41, %c0_56], %124 {strides = array<i32>} : memref<64x256xf32, #tpu.memory_space<vmem>>, vector<1x256xf32>,
    %c6_57 = arith.constant 6 : index
    %126 = memref.load %arg0[%c6_57] : memref<16xi32, #tpu.memory_space<smem>>
    %127 = arith.index_cast %126 : i32 to index
    %c0_58 = arith.constant 0 : index
    %128 = vector.load %arg1[%127, %c0_58] : memref<50x256xf32, #tpu.memory_space<vmem>>, vector<1x256xf32>
    %c1_59 = arith.constant 1 : index
    %129 = memref.load %arg0[%c1_59] : memref<16xi32, #tpu.memory_space<smem>>
    %130 = arith.index_cast %129 : i32 to index
    %c0_60 = arith.constant 0 : index
    %131 = vector.load %arg1[%130, %c0_60] : memref<50x256xf32, #tpu.memory_space<vmem>>, vector<1x256xf32>
    %132 = arith.select %18, %128, %131 : vector<1x256xi1>, vector<1x256xf32>
    %c48 = arith.constant 48 : index
    %c0_61 = arith.constant 0 : index
    %133 = vector.load %arg6[%c48, %c0_61] : memref<64x256xf32, #tpu.memory_space<vmem>>, vector<1x256xf32>
    tpu.vector_store %arg6[%c48, %c0_61], %132 {strides = array<i32>} : memref<64x256xf32, #tpu.memory_space<vmem>>, vector<1x256xf32>,
    %c14_62 = arith.constant 14 : index
    %134 = memref.load %arg0[%c14_62] : memref<16xi32, #tpu.memory_space<smem>>
    %135 = arith.index_cast %134 : i32 to index
    %c0_63 = arith.constant 0 : index
    %136 = vector.load %arg1[%135, %c0_63] : memref<50x256xf32, #tpu.memory_space<vmem>>, vector<1x256xf32>
    %c9_64 = arith.constant 9 : index
    %137 = memref.load %arg0[%c9_64] : memref<16xi32, #tpu.memory_space<smem>>
    %138 = arith.index_cast %137 : i32 to index
    %c0_65 = arith.constant 0 : index
    %139 = vector.load %arg1[%138, %c0_65] : memref<50x256xf32, #tpu.memory_space<vmem>>, vector<1x256xf32>
    %140 = arith.select %18, %136, %139 : vector<1x256xi1>, vector<1x256xf32>
    %c49 = arith.constant 49 : index
    %c0_66 = arith.constant 0 : index
    %141 = vector.load %arg6[%c49, %c0_66] : memref<64x256xf32, #tpu.memory_space<vmem>>, vector<1x256xf32>
    tpu.vector_store %arg6[%c49, %c0_66], %140 {strides = array<i32>} : memref<64x256xf32, #tpu.memory_space<vmem>>, vector<1x256xf32>,
    %c7_67 = arith.constant 7 : index
    %142 = memref.load %arg0[%c7_67] : memref<16xi32, #tpu.memory_space<smem>>
    %143 = arith.index_cast %142 : i32 to index
    %c0_68 = arith.constant 0 : index
    %144 = vector.load %arg1[%143, %c0_68] : memref<50x256xf32, #tpu.memory_space<vmem>>, vector<1x256xf32>
    %c0_69 = arith.constant 0 : index
    %145 = memref.load %arg0[%c0_69] : memref<16xi32, #tpu.memory_space<smem>>
    %146 = arith.index_cast %145 : i32 to index
    %c0_70 = arith.constant 0 : index
    %147 = vector.load %arg1[%146, %c0_70] : memref<50x256xf32, #tpu.memory_space<vmem>>, vector<1x256xf32>
    %148 = arith.select %18, %144, %147 : vector<1x256xi1>, vector<1x256xf32>
    %c56 = arith.constant 56 : index
    %c0_71 = arith.constant 0 : index
    %149 = vector.load %arg6[%c56, %c0_71] : memref<64x256xf32, #tpu.memory_space<vmem>>, vector<1x256xf32>
    tpu.vector_store %arg6[%c56, %c0_71], %148 {strides = array<i32>} : memref<64x256xf32, #tpu.memory_space<vmem>>, vector<1x256xf32>,
    %c15_72 = arith.constant 15 : index
    %150 = memref.load %arg0[%c15_72] : memref<16xi32, #tpu.memory_space<smem>>
    %151 = arith.index_cast %150 : i32 to index
    %c0_73 = arith.constant 0 : index
    %152 = vector.load %arg1[%151, %c0_73] : memref<50x256xf32, #tpu.memory_space<vmem>>, vector<1x256xf32>
    %c8_74 = arith.constant 8 : index
    %153 = memref.load %arg0[%c8_74] : memref<16xi32, #tpu.memory_space<smem>>
    %154 = arith.index_cast %153 : i32 to index
    %c0_75 = arith.constant 0 : index
    %155 = vector.load %arg1[%154, %c0_75] : memref<50x256xf32, #tpu.memory_space<vmem>>, vector<1x256xf32>
    %156 = arith.select %18, %152, %155 : vector<1x256xi1>, vector<1x256xf32>
    %c57 = arith.constant 57 : index
    %c0_76 = arith.constant 0 : index
    %157 = vector.load %arg6[%c57, %c0_76] : memref<64x256xf32, #tpu.memory_space<vmem>>, vector<1x256xf32>
    tpu.vector_store %arg6[%c57, %c0_76], %156 {strides = array<i32>} : memref<64x256xf32, #tpu.memory_space<vmem>>, vector<1x256xf32>,
    %c0_77 = arith.constant 0 : index
    %c0_78 = arith.constant 0 : index
    %158 = vector.load %arg2[%c0_77, %c0_78] : memref<64x256xbf16, #tpu.memory_space<vmem>>, vector<64x256xbf16>
    %cst_79 = arith.constant 0.000000e+00 : f32
    %159 = vector.broadcast %cst_79 : f32 to vector<8x64xf32>
    %cst_80 = arith.constant 0.000000e+00 : f32
    %160 = vector.broadcast %cst_80 : f32 to vector<8x64xf32>
    %cst_81 = arith.constant 0.000000e+00 : f32
    %161 = vector.broadcast %cst_81 : f32 to vector<8x64xf32>
    %c0_82 = arith.constant 0 : index
    %c0_83 = arith.constant 0 : index
    %162 = vector.load %arg6[%c0_82, %c0_83] : memref<64x256xf32, #tpu.memory_space<vmem>>, vector<8x256xf32>
    %163 = arith.truncf %159 : vector<8x64xf32> to vector<8x64xbf16>
    %cst_84 = arith.constant dense<0.000000e+00> : vector<8x256xf32>
    %164 = tpu.matmul %163, %158, %cst_84 {dimension_numbers = #tpu.dot_dimension_numbers<[1], [0], [0], [1], [0, 0, 1, 1], [], []>} : vector<8x64xbf16>, vector<64x256xbf16>, vector<8x256xf32> -> vector<8x256xf32>
    %165 = arith.addf %162, %164 : vector<8x256xf32>
    %166 = arith.mulf %24, %165 : vector<8x256xf32>
    %167 = math.tanh %166 : vector<8x256xf32>
    %168 = arith.mulf %24, %167 : vector<8x256xf32>
    %169 = arith.addf %168, %27 : vector<8x256xf32>
    %170 = vector.extract_strided_slice %169 {offsets = [0, 0], sizes = [8, 64], strides = [1, 1]} : vector<8x256xf32> to vector<8x64xf32>
    %171 = vector.extract_strided_slice %169 {offsets = [0, 64], sizes = [8, 64], strides = [1, 1]} : vector<8x256xf32> to vector<8x64xf32>
    %172 = vector.extract_strided_slice %169 {offsets = [0, 128], sizes = [8, 64], strides = [1, 1]} : vector<8x256xf32> to vector<8x64xf32>
    %173 = vector.extract_strided_slice %169 {offsets = [0, 192], sizes = [8, 64], strides = [1, 1]} : vector<8x256xf32> to vector<8x64xf32>
    %174 = arith.mulf %170, %160 : vector<8x64xf32>
    %175 = arith.mulf %171, %173 : vector<8x64xf32>
    %176 = arith.addf %174, %175 : vector<8x64xf32>
    %177 = math.tanh %176 : vector<8x64xf32>
    %178 = arith.mulf %172, %177 : vector<8x64xf32>
    %179 = arith.addf %161, %178 : vector<8x64xf32>
    %c8_85 = arith.constant 8 : index
    %c0_86 = arith.constant 0 : index
    %180 = vector.load %arg6[%c8_85, %c0_86] : memref<64x256xf32, #tpu.memory_space<vmem>>, vector<8x256xf32>
    %181 = arith.truncf %178 : vector<8x64xf32> to vector<8x64xbf16>
    %cst_87 = arith.constant dense<0.000000e+00> : vector<8x256xf32>
    %182 = tpu.matmul %181, %158, %cst_87 {dimension_numbers = #tpu.dot_dimension_numbers<[1], [0], [0], [1], [0, 0, 1, 1], [], []>} : vector<8x64xbf16>, vector<64x256xbf16>, vector<8x256xf32> -> vector<8x256xf32>
    %183 = arith.addf %180, %182 : vector<8x256xf32>
    %184 = arith.mulf %24, %183 : vector<8x256xf32>
    %185 = math.tanh %184 : vector<8x256xf32>
    %186 = arith.mulf %24, %185 : vector<8x256xf32>
    %187 = arith.addf %186, %27 : vector<8x256xf32>
    %188 = vector.extract_strided_slice %187 {offsets = [0, 0], sizes = [8, 64], strides = [1, 1]} : vector<8x256xf32> to vector<8x64xf32>
    %189 = vector.extract_strided_slice %187 {offsets = [0, 64], sizes = [8, 64], strides = [1, 1]} : vector<8x256xf32> to vector<8x64xf32>
    %190 = vector.extract_strided_slice %187 {offsets = [0, 128], sizes = [8, 64], strides = [1, 1]} : vector<8x256xf32> to vector<8x64xf32>
    %191 = vector.extract_strided_slice %187 {offsets = [0, 192], sizes = [8, 64], strides = [1, 1]} : vector<8x256xf32> to vector<8x64xf32>
    %192 = arith.mulf %188, %176 : vector<8x64xf32>
    %193 = arith.mulf %189, %191 : vector<8x64xf32>
    %194 = arith.addf %192, %193 : vector<8x64xf32>
    %195 = math.tanh %194 : vector<8x64xf32>
    %196 = arith.mulf %190, %195 : vector<8x64xf32>
    %197 = arith.addf %179, %196 : vector<8x64xf32>
    %c16_88 = arith.constant 16 : index
    %c0_89 = arith.constant 0 : index
    %198 = vector.load %arg6[%c16_88, %c0_89] : memref<64x256xf32, #tpu.memory_space<vmem>>, vector<8x256xf32>
    %199 = arith.truncf %196 : vector<8x64xf32> to vector<8x64xbf16>
    %cst_90 = arith.constant dense<0.000000e+00> : vector<8x256xf32>
    %200 = tpu.matmul %199, %158, %cst_90 {dimension_numbers = #tpu.dot_dimension_numbers<[1], [0], [0], [1], [0, 0, 1, 1], [], []>} : vector<8x64xbf16>, vector<64x256xbf16>, vector<8x256xf32> -> vector<8x256xf32>
    %201 = arith.addf %198, %200 : vector<8x256xf32>
    %202 = arith.mulf %24, %201 : vector<8x256xf32>
    %203 = math.tanh %202 : vector<8x256xf32>
    %204 = arith.mulf %24, %203 : vector<8x256xf32>
    %205 = arith.addf %204, %27 : vector<8x256xf32>
    %206 = vector.extract_strided_slice %205 {offsets = [0, 0], sizes = [8, 64], strides = [1, 1]} : vector<8x256xf32> to vector<8x64xf32>
    %207 = vector.extract_strided_slice %205 {offsets = [0, 64], sizes = [8, 64], strides = [1, 1]} : vector<8x256xf32> to vector<8x64xf32>
    %208 = vector.extract_strided_slice %205 {offsets = [0, 128], sizes = [8, 64], strides = [1, 1]} : vector<8x256xf32> to vector<8x64xf32>
    %209 = vector.extract_strided_slice %205 {offsets = [0, 192], sizes = [8, 64], strides = [1, 1]} : vector<8x256xf32> to vector<8x64xf32>
    %210 = arith.mulf %206, %194 : vector<8x64xf32>
    %211 = arith.mulf %207, %209 : vector<8x64xf32>
    %212 = arith.addf %210, %211 : vector<8x64xf32>
    %213 = math.tanh %212 : vector<8x64xf32>
    %214 = arith.mulf %208, %213 : vector<8x64xf32>
    %215 = arith.addf %197, %214 : vector<8x64xf32>
    %c24_91 = arith.constant 24 : index
    %c0_92 = arith.constant 0 : index
    %216 = vector.load %arg6[%c24_91, %c0_92] : memref<64x256xf32, #tpu.memory_space<vmem>>, vector<8x256xf32>
    %217 = arith.truncf %214 : vector<8x64xf32> to vector<8x64xbf16>
    %cst_93 = arith.constant dense<0.000000e+00> : vector<8x256xf32>
    %218 = tpu.matmul %217, %158, %cst_93 {dimension_numbers = #tpu.dot_dimension_numbers<[1], [0], [0], [1], [0, 0, 1, 1], [], []>} : vector<8x64xbf16>, vector<64x256xbf16>, vector<8x256xf32> -> vector<8x256xf32>
    %219 = arith.addf %216, %218 : vector<8x256xf32>
    %220 = arith.mulf %24, %219 : vector<8x256xf32>
    %221 = math.tanh %220 : vector<8x256xf32>
    %222 = arith.mulf %24, %221 : vector<8x256xf32>
    %223 = arith.addf %222, %27 : vector<8x256xf32>
    %224 = vector.extract_strided_slice %223 {offsets = [0, 0], sizes = [8, 64], strides = [1, 1]} : vector<8x256xf32> to vector<8x64xf32>
    %225 = vector.extract_strided_slice %223 {offsets = [0, 64], sizes = [8, 64], strides = [1, 1]} : vector<8x256xf32> to vector<8x64xf32>
    %226 = vector.extract_strided_slice %223 {offsets = [0, 128], sizes = [8, 64], strides = [1, 1]} : vector<8x256xf32> to vector<8x64xf32>
    %227 = vector.extract_strided_slice %223 {offsets = [0, 192], sizes = [8, 64], strides = [1, 1]} : vector<8x256xf32> to vector<8x64xf32>
    %228 = arith.mulf %224, %212 : vector<8x64xf32>
    %229 = arith.mulf %225, %227 : vector<8x64xf32>
    %230 = arith.addf %228, %229 : vector<8x64xf32>
    %231 = math.tanh %230 : vector<8x64xf32>
    %232 = arith.mulf %226, %231 : vector<8x64xf32>
    %233 = arith.addf %215, %232 : vector<8x64xf32>
    %c32_94 = arith.constant 32 : index
    %c0_95 = arith.constant 0 : index
    %234 = vector.load %arg6[%c32_94, %c0_95] : memref<64x256xf32, #tpu.memory_space<vmem>>, vector<8x256xf32>
    %235 = arith.truncf %232 : vector<8x64xf32> to vector<8x64xbf16>
    %cst_96 = arith.constant dense<0.000000e+00> : vector<8x256xf32>
    %236 = tpu.matmul %235, %158, %cst_96 {dimension_numbers = #tpu.dot_dimension_numbers<[1], [0], [0], [1], [0, 0, 1, 1], [], []>} : vector<8x64xbf16>, vector<64x256xbf16>, vector<8x256xf32> -> vector<8x256xf32>
    %237 = arith.addf %234, %236 : vector<8x256xf32>
    %238 = arith.mulf %24, %237 : vector<8x256xf32>
    %239 = math.tanh %238 : vector<8x256xf32>
    %240 = arith.mulf %24, %239 : vector<8x256xf32>
    %241 = arith.addf %240, %27 : vector<8x256xf32>
    %242 = vector.extract_strided_slice %241 {offsets = [0, 0], sizes = [8, 64], strides = [1, 1]} : vector<8x256xf32> to vector<8x64xf32>
    %243 = vector.extract_strided_slice %241 {offsets = [0, 64], sizes = [8, 64], strides = [1, 1]} : vector<8x256xf32> to vector<8x64xf32>
    %244 = vector.extract_strided_slice %241 {offsets = [0, 128], sizes = [8, 64], strides = [1, 1]} : vector<8x256xf32> to vector<8x64xf32>
    %245 = vector.extract_strided_slice %241 {offsets = [0, 192], sizes = [8, 64], strides = [1, 1]} : vector<8x256xf32> to vector<8x64xf32>
    %246 = arith.mulf %242, %230 : vector<8x64xf32>
    %247 = arith.mulf %243, %245 : vector<8x64xf32>
    %248 = arith.addf %246, %247 : vector<8x64xf32>
    %249 = math.tanh %248 : vector<8x64xf32>
    %250 = arith.mulf %244, %249 : vector<8x64xf32>
    %251 = arith.addf %233, %250 : vector<8x64xf32>
    %c40_97 = arith.constant 40 : index
    %c0_98 = arith.constant 0 : index
    %252 = vector.load %arg6[%c40_97, %c0_98] : memref<64x256xf32, #tpu.memory_space<vmem>>, vector<8x256xf32>
    %253 = arith.truncf %250 : vector<8x64xf32> to vector<8x64xbf16>
    %cst_99 = arith.constant dense<0.000000e+00> : vector<8x256xf32>
    %254 = tpu.matmul %253, %158, %cst_99 {dimension_numbers = #tpu.dot_dimension_numbers<[1], [0], [0], [1], [0, 0, 1, 1], [], []>} : vector<8x64xbf16>, vector<64x256xbf16>, vector<8x256xf32> -> vector<8x256xf32>
    %255 = arith.addf %252, %254 : vector<8x256xf32>
    %256 = arith.mulf %24, %255 : vector<8x256xf32>
    %257 = math.tanh %256 : vector<8x256xf32>
    %258 = arith.mulf %24, %257 : vector<8x256xf32>
    %259 = arith.addf %258, %27 : vector<8x256xf32>
    %260 = vector.extract_strided_slice %259 {offsets = [0, 0], sizes = [8, 64], strides = [1, 1]} : vector<8x256xf32> to vector<8x64xf32>
    %261 = vector.extract_strided_slice %259 {offsets = [0, 64], sizes = [8, 64], strides = [1, 1]} : vector<8x256xf32> to vector<8x64xf32>
    %262 = vector.extract_strided_slice %259 {offsets = [0, 128], sizes = [8, 64], strides = [1, 1]} : vector<8x256xf32> to vector<8x64xf32>
    %263 = vector.extract_strided_slice %259 {offsets = [0, 192], sizes = [8, 64], strides = [1, 1]} : vector<8x256xf32> to vector<8x64xf32>
    %264 = arith.mulf %260, %248 : vector<8x64xf32>
    %265 = arith.mulf %261, %263 : vector<8x64xf32>
    %266 = arith.addf %264, %265 : vector<8x64xf32>
    %267 = math.tanh %266 : vector<8x64xf32>
    %268 = arith.mulf %262, %267 : vector<8x64xf32>
    %269 = arith.addf %251, %268 : vector<8x64xf32>
    %c48_100 = arith.constant 48 : index
    %c0_101 = arith.constant 0 : index
    %270 = vector.load %arg6[%c48_100, %c0_101] : memref<64x256xf32, #tpu.memory_space<vmem>>, vector<8x256xf32>
    %271 = arith.truncf %268 : vector<8x64xf32> to vector<8x64xbf16>
    %cst_102 = arith.constant dense<0.000000e+00> : vector<8x256xf32>
    %272 = tpu.matmul %271, %158, %cst_102 {dimension_numbers = #tpu.dot_dimension_numbers<[1], [0], [0], [1], [0, 0, 1, 1], [], []>} : vector<8x64xbf16>, vector<64x256xbf16>, vector<8x256xf32> -> vector<8x256xf32>
    %273 = arith.addf %270, %272 : vector<8x256xf32>
    %274 = arith.mulf %24, %273 : vector<8x256xf32>
    %275 = math.tanh %274 : vector<8x256xf32>
    %276 = arith.mulf %24, %275 : vector<8x256xf32>
    %277 = arith.addf %276, %27 : vector<8x256xf32>
    %278 = vector.extract_strided_slice %277 {offsets = [0, 0], sizes = [8, 64], strides = [1, 1]} : vector<8x256xf32> to vector<8x64xf32>
    %279 = vector.extract_strided_slice %277 {offsets = [0, 64], sizes = [8, 64], strides = [1, 1]} : vector<8x256xf32> to vector<8x64xf32>
    %280 = vector.extract_strided_slice %277 {offsets = [0, 128], sizes = [8, 64], strides = [1, 1]} : vector<8x256xf32> to vector<8x64xf32>
    %281 = vector.extract_strided_slice %277 {offsets = [0, 192], sizes = [8, 64], strides = [1, 1]} : vector<8x256xf32> to vector<8x64xf32>
    %282 = arith.mulf %278, %266 : vector<8x64xf32>
    %283 = arith.mulf %279, %281 : vector<8x64xf32>
    %284 = arith.addf %282, %283 : vector<8x64xf32>
    %285 = math.tanh %284 : vector<8x64xf32>
    %286 = arith.mulf %280, %285 : vector<8x64xf32>
    %287 = arith.addf %269, %286 : vector<8x64xf32>
    %c56_103 = arith.constant 56 : index
    %c0_104 = arith.constant 0 : index
    %288 = vector.load %arg6[%c56_103, %c0_104] : memref<64x256xf32, #tpu.memory_space<vmem>>, vector<8x256xf32>
    %289 = arith.truncf %286 : vector<8x64xf32> to vector<8x64xbf16>
    %cst_105 = arith.constant dense<0.000000e+00> : vector<8x256xf32>
    %290 = tpu.matmul %289, %158, %cst_105 {dimension_numbers = #tpu.dot_dimension_numbers<[1], [0], [0], [1], [0, 0, 1, 1], [], []>} : vector<8x64xbf16>, vector<64x256xbf16>, vector<8x256xf32> -> vector<8x256xf32>
    %291 = arith.addf %288, %290 : vector<8x256xf32>
    %292 = arith.mulf %24, %291 : vector<8x256xf32>
    %293 = math.tanh %292 : vector<8x256xf32>
    %294 = arith.mulf %24, %293 : vector<8x256xf32>
    %295 = arith.addf %294, %27 : vector<8x256xf32>
    %296 = vector.extract_strided_slice %295 {offsets = [0, 0], sizes = [8, 64], strides = [1, 1]} : vector<8x256xf32> to vector<8x64xf32>
    %297 = vector.extract_strided_slice %295 {offsets = [0, 64], sizes = [8, 64], strides = [1, 1]} : vector<8x256xf32> to vector<8x64xf32>
    %298 = vector.extract_strided_slice %295 {offsets = [0, 128], sizes = [8, 64], strides = [1, 1]} : vector<8x256xf32> to vector<8x64xf32>
    %299 = vector.extract_strided_slice %295 {offsets = [0, 192], sizes = [8, 64], strides = [1, 1]} : vector<8x256xf32> to vector<8x64xf32>
    %300 = arith.mulf %296, %284 : vector<8x64xf32>
    %301 = arith.mulf %297, %299 : vector<8x64xf32>
    %302 = arith.addf %300, %301 : vector<8x64xf32>
    %303 = math.tanh %302 : vector<8x64xf32>
    %304 = arith.mulf %298, %303 : vector<8x64xf32>
    %305 = arith.addf %287, %304 : vector<8x64xf32>
    %cst_106 = arith.constant 1.250000e-01 : f32
    %306 = vector.broadcast %cst_106 : f32 to vector<8x64xf32>
    %307 = arith.mulf %305, %306 : vector<8x64xf32>
    %cst_107 = arith.constant dense<0.000000e+00> : vector<8xf32>
    %308 = vector.multi_reduction <add>, %307, %cst_107 [1] : vector<8x64xf32> to vector<8xf32>
    %309 = vector.shape_cast %308 : vector<8xf32> to vector<8x1xf32>
    %cst_108 = arith.constant 6.400000e+01 : f32
    %310 = vector.broadcast %cst_108 : f32 to vector<8x1xf32>
    %311 = arith.divf %309, %310 : vector<8x1xf32>
    %312 = vector.broadcast %311 : vector<8x1xf32> to vector<8x64xf32>
    %313 = arith.subf %307, %312 : vector<8x64xf32>
    %314 = arith.mulf %313, %313 : vector<8x64xf32>
    %cst_109 = arith.constant dense<0.000000e+00> : vector<8xf32>
    %315 = vector.multi_reduction <add>, %314, %cst_109 [1] : vector<8x64xf32> to vector<8xf32>
    %316 = vector.shape_cast %315 : vector<8xf32> to vector<8x1xf32>
    %cst_110 = arith.constant 6.400000e+01 : f32
    %317 = vector.broadcast %cst_110 : f32 to vector<8x1xf32>
    %318 = arith.divf %316, %317 : vector<8x1xf32>
    %319 = vector.broadcast %311 : vector<8x1xf32> to vector<8x64xf32>
    %320 = arith.subf %307, %319 : vector<8x64xf32>
    %cst_111 = arith.constant 9.99999974E-6 : f32
    %321 = vector.broadcast %cst_111 : f32 to vector<8x1xf32>
    %322 = arith.addf %318, %321 : vector<8x1xf32>
    %323 = math.rsqrt %322 : vector<8x1xf32>
    %324 = vector.broadcast %323 : vector<8x1xf32> to vector<8x64xf32>
    %325 = arith.mulf %320, %324 : vector<8x64xf32>
    %326 = arith.truncf %325 : vector<8x64xf32> to vector<8x64xbf16>
    %c0_112 = arith.constant 0 : index
    %c0_113 = arith.constant 0 : index
    %327 = vector.load %arg3[%c0_112, %c0_113] : memref<64x128xbf16, #tpu.memory_space<vmem>>, vector<64x128xbf16>
    %cst_114 = arith.constant dense<0.000000e+00> : vector<8x128xf32>
    %328 = tpu.matmul %326, %327, %cst_114 {dimension_numbers = #tpu.dot_dimension_numbers<[1], [0], [0], [1], [0, 0, 1, 1], [], []>} : vector<8x64xbf16>, vector<64x128xbf16>, vector<8x128xf32> -> vector<8x128xf32>
    %c0_115 = arith.constant 0 : index
    %c0_116 = arith.constant 0 : index
    %329 = vector.load %arg4[%c0_115, %c0_116] : memref<1x128xf32, #tpu.memory_space<vmem>>, vector<1x128xf32>
    %330 = vector.broadcast %329 : vector<1x128xf32> to vector<8x128xf32>
    %331 = arith.addf %328, %330 : vector<8x128xf32>
    %c0_117 = arith.constant 0 : index
    %c0_118 = arith.constant 0 : index
    %332 = vector.load %arg5[%c0_117, %c0_118] : memref<8x128xf32, #tpu.memory_space<vmem>>, vector<8x128xf32>
    tpu.vector_store %arg5[%c0_117, %c0_118], %331 {strides = array<i32>} : memref<8x128xf32, #tpu.memory_space<vmem>>, vector<8x128xf32>,
    return
  }
}

</mosaic_0001>

<bundles_post_ra>
// kernel: seq_classifier_forward.1
= control target key start
LH: loop header
LB: loop body
LE: loop exit
PB: predicated region body
PF: predicated region fallthrough
CT: control target
= control target key end

     0   :  { %10 = vsyncpa [#allocation4], 0  ;;  %s2787_s0 = inlined_call_operand.vmem [shape: s32[16], index: 0, kind: input, shape index: {}]   ;;  %s2788_s1 = inlined_call_operand.vmem [shape: f32[50,256], index: 1, kind: input, shape index: {}]   ;;  %s2789_s2 = inlined_call_operand.vmem [shape: bf16[64,256], index: 2, kind: input, shape index: {}]   ;;  %s2790_s3 = inlined_call_operand.vmem [shape: bf16[64,128], index: 3, kind: input, shape index: {}]   ;;  %s2791_s4 = inlined_call_operand.vmem [shape: f32[1,128], index: 4, kind: input, shape index: {}]   ;;  %s2792_s5 = inlined_call_operand.vmem [shape: f32[8,128], index: 5, kind: output, shape index: {}]  }
   0x1   :  { %s17_s20 = sshll.u32 %s2787_s0, 4  ;;  %s18_s20 = int_to_ptr.vmem [resolvable:$true] %s17_s20 }
   0x2   :  { %s2149_s21 = scalar_lea.vmem %s18_s20, 16  ;;  %p2154_p1 = scmp.lt.s32.totalorder %s18_s20, %s18_s20 }
   0x3   :  { %p2150_p0 = scmp.ne.s32.totalorder %s18_s20, %s2149_s21  ;;  %p2155_p2 = scmp.lt.s32.totalorder %s2149_s21, %s2149_s21 }
   0x5   :  { %p2156_p3 = por %p2155_p2, %p2154_p1 }
   0x7   :  { %p2157_p4 = pnand %p2156_p3, %p2150_p0 }
   0x9   :  { %2160 = shalt.err (!%p2157_p4)
}
   0xa   :  { %s2163_s22 = smov [#allocation3]  }
   0xb   :  { %20 = dma.vmem_to_smem %s18_s20, 16, %s2163_s22, [#allocation4]  }
   0xc   :  { %2161 = dma.done.wait [#allocation4], 16  }
   0xd   :  { %2162 = vsyncadd [#allocation4], 4294967280 }
   0xe   :  { %32 = sfence }
   0xf   :  { %v2206_v0 = vld [vmem:[%s2789_s2 + $0x4] ss:$8 sps:$4 sm:$0xff]   ;;  %v34_v1 = vlaneseq  ;;  %v2211_v2 = vld [vmem:[%s2789_s2] ss:$8 sps:$4 sm:$0xff]   ;;  %v2164_v3 = vmov 0   ;;  %v2165_v4 = vmov 0.0  }
  0x10   :  { %1214 = vmatprep.mubr.bf16.mxu0 %v2164_v3  ;;  %69 = vst [vmem:[#allocation2] sm:$0xff] %v2165_v4  ;;  %70 = vst [vmem:[#allocation2 + $0x8] sm:$0xff] %v2165_v4  ;;  %s2216_s26 = sld [smem:[#allocation3]]  ;;  %1281 = vmatprep.mubr.bf16.mxu1 %v2164_v3  ;;  %v2237_v5 = vld [vmem:[%s2789_s2 + $0x14] ss:$8 sps:$4 sm:$0xff]   ;;  %s2261_s10 = sld [smem:[#allocation3 + $0x7]] }
  0x11   :  { %71 = vst [vmem:[#allocation2 + $0x10] sm:$0xff] %v2165_v4  ;;  %72 = vst [vmem:[#allocation2 + $0x18] sm:$0xff] %v2165_v4  ;;  %1182 = vmatprep.subr.bf16.mxu0 %v2206_v0  ;;  %v35_v6 = vand.u32 127, %v34_v1  ;;  %1249 = vmatprep.subr.bf16.mxu1 %v2206_v0  ;;  %v2245_v7 = vld [vmem:[%s2789_s2 + $0x10] ss:$8 sps:$4 sm:$0xff]   ;;  %v107_v8 = vshrl.u32 %v34_v1, 7 }
  0x12   :  { %73 = vst [vmem:[#allocation2 + $0x20] sm:$0xff] %v2165_v4  ;;  %74 = vst [vmem:[#allocation2 + $0x28] sm:$0xff] %v2165_v4  ;;  %1183 = vmatpush1.bf16.msra.mxu0 %v2211_v2  ;;  %1250 = vmatpush1.bf16.msra.mxu1 %v2211_v2  ;;  %v2253_v9 = vld [vmem:[%s2789_s2 + $0x24] ss:$8 sps:$4 sm:$0xff]   ;;  %v2259_v10 = vld [vmem:[%s2789_s2 + $0x20] ss:$8 sps:$4 sm:$0xff]  }
  0x13   :  { %75 = vst [vmem:[#allocation2 + $0x30] sm:$0xff] %v2165_v4  ;;  %76 = vst [vmem:[#allocation2 + $0x38] sm:$0xff] %v2165_v4  ;;  %1184 = vmatprep.subr.bf16.mxu0 %v2237_v5  ;;  %1251 = vmatprep.subr.bf16.mxu1 %v2237_v5  ;;  %v2266_v11 = vld [vmem:[%s2789_s2 + $0x34] ss:$8 sps:$4 sm:$0xff]   ;;  %v2268_v12 = vadd.s32 128, %v35_v6  ;;  %v41_v13 = vand.u32 63, %v35_v6 }
  0x14   :  { %77 = vst [vmem:[#allocation2 + $0x40] sm:$0xff] %v2165_v4  ;;  %78 = vst [vmem:[#allocation2 + $0x48] sm:$0xff] %v2165_v4  ;;  %v2270_v14 = vsub.s32 0, %v107_v8  ;;  %v2277_v15 = vsub.s32 1, %v107_v8  ;;  %s2279_s16 = sld [smem:[#allocation3 + $0x8]]  ;;  %s2287_s20 = sld [smem:[#allocation3 + $0xf]] }
  0x15   :  { %79 = vst [vmem:[#allocation2 + $0x50] sm:$0xff] %v2165_v4  ;;  %80 = vst [vmem:[#allocation2 + $0x58] sm:$0xff] %v2165_v4  ;;  %v2285_v16 = vld [vmem:[%s2789_s2 + $0x30] ss:$8 sps:$4 sm:$0xff]   ;;  %v2166_v17 = vmov 1966171168  }
  0x16   :  { %81 = vst [vmem:[#allocation2 + $0x60] sm:$0xff] %v2165_v4  ;;  %82 = vst [vmem:[#allocation2 + $0x68] sm:$0xff] %v2165_v4  ;;  %1185 = vmatpush1.bf16.msra.mxu0 %v2245_v7  ;;  %s86_s13 = sshra.s32 %s2216_s26, 3  ;;  %s89_s14 = sand.u32 7, %s2216_s26  ;;  %1252 = vmatpush1.bf16.msra.mxu1 %v2245_v7  ;;  %v133_v18 = vunpack.c.l.s4 %v2166_v17  ;;  %v48_v19 = vand.u32 63, %v2268_v12  ;;  %vm2299_vm0 = vcmp.lt.s32.totalorder %v41_v13, 32 }
  0x17   :  { %83 = vst [vmem:[#allocation2 + $0x70] sm:$0xff] %v2165_v4  ;;  %84 = vst [vmem:[#allocation2 + $0x78] sm:$0xff] %v2165_v4  ;;  %1186 = vmatprep.subr.bf16.mxu0 %v2253_v9  ;;  %s2027_s15 = sshll.u32 %s86_s13, 4  ;;  %1253 = vmatprep.subr.bf16.mxu1 %v2253_v9  ;;  %s96_s24 = sshra.s32 %s2261_s10, 3  ;;  %vm2342_vm2 = vcmp.lt.s32.totalorder %v34_v1, 256  ;;  %vm64_vm3 = vcmp.ge.s32.totalorder %v2268_v12, 192 }
  0x18   :  { %s92_s19 = sadd.s32 %s2027_s15, %s89_s14  ;;  %s99_s0 = sand.u32 7, %s2261_s10  ;;  %v134_v21 = vunpack.c.0.s8 %v133_v18  ;;  %vm2310_vm1 = vcmp.lt.s32.totalorder %v48_v19, 32  ;;  %v2167_v51 = vmov 0.5   ;;  %vm1178_vm4 = vcmask 523264  }
  0x19   :  { %s93_s23 = scalar_lea.vmem %s2788_s1, %s92_s19  ;;  %s2028_s2 = sshll.u32 %s96_s24, 4  ;;  %v2368_v52 = vsel %vm64_vm3, 1.0, %v2167_v51  ;;  %v2373_v61 = vsel %vm64_vm3, 0.0, %v2167_v51  ;;  %vm2169_vm5 = vmmov 0  }
  0x1a   :  { %1187 = vmatpush1.bf16.msra.mxu0 %v2259_v10  ;;  %v94_v20 = vld [vmem:[%s93_s23] ss:$8 sm:$0x3]  ;;  %1254 = vmatpush1.bf16.msra.mxu1 %v2259_v10  ;;  %s102_s25 = sadd.s32 %s2028_s2, %s99_s0  ;;  %s154_s29 = sshra.s32 %s2279_s16, 3  ;;  %v2321_v29 = vsub.s32 %v134_v21, %v107_v8 }
  0x1b   :  { %1188 = vmatprep.subr.bf16.mxu0 %v2266_v11  ;;  %1255 = vmatprep.subr.bf16.mxu1 %v2266_v11  ;;  %s103_s28 = scalar_lea.vmem %s2788_s1, %s102_s25  ;;  %v109_v23 = vrot.slane %v94_v20, %v2270_v14  ;;  %v113_v24 = vrot.slane %v94_v20, %v2277_v15  ;;  %s157_s30 = sand.u32 7, %s2279_s16 }
  0x1c   :  { %v104_v26 = vld [vmem:[%s103_s28] ss:$8 sm:$0x3]  ;;  %s2029_s6 = sshll.u32 %s154_s29, 4  ;;  %s164_s8 = sshra.s32 %s2287_s20, 3 }
  0x1d   :  { %v120_v27 = vrot.slane %v104_v26, %v2270_v14  ;;  %v124_v28 = vrot.slane %v104_v26, %v2277_v15  ;;  %s160_s7 = sadd.s32 %s2029_s6, %s157_s30  ;;  %s167_s12 = sand.u32 7, %s2287_s20 }
  0x1e   :  { %1189 = vmatpush1.bf16.msra.mxu0 %v2285_v16  ;;  %1256 = vmatpush1.bf16.msra.mxu1 %v2285_v16  ;;  %s161_s11 = scalar_lea.vmem %s2788_s1, %s160_s7  ;;  %s2030_s13 = sshll.u32 %s164_s8, 4 }
  0x1f   :  { %1316 = vmatprep.subr.bf16.mxu0 %v2206_v0  ;;  %1383 = vmatprep.subr.bf16.mxu1 %v2206_v0  ;;  %v127_v30 = vsel %vm2299_vm0, %v109_v23, %v120_v27  ;;  %v128_v31 = vsel %vm2310_vm1, %v113_v24, %v124_v28  ;;  %v162_v32 = vld [vmem:[%s161_s11] ss:$8 sm:$0x3]  ;;  %s170_s14 = sadd.s32 %s2030_s13, %s167_s12  ;;  %s2168_s18 = smov 64  }
  0x20   :  { %v131_v33 = vcombine.low %v127_v30, %v128_v31  ;;  %s171_s17 = scalar_lea.vmem %s2788_s1, %s170_s14  ;;  %v177_v34 = vrot.slane %v162_v32, %v2270_v14  ;;  %v181_v35 = vrot.slane %v162_v32, %v2277_v15  ;;  %s1923_s19 = sld [smem:[#allocation3 + $0x1]] }
  0x21   :  { %1215 = vmatmul.mubr.bf16.vlgmr.msra.gmra.mrb[0].mxu0 %v2164_v3  ;;  %v172_v37 = vld [vmem:[%s171_s17] ss:$8 sm:$0x3]  ;;  %s1926_s20 = sld [smem:[#allocation3 + $0x6]]  ;;  %s1929_s21 = sld [smem:[#allocation3 + $0x9]] }
  0x22   :  { %1317 = vmatpush1.bf16.msra.mxu0 %v2211_v2  ;;  %1348 = vmatprep.mubr.bf16.mxu0 %v2164_v3  ;;  %v138_v36 = vrot.slane %v131_v33, %v2321_v29  ;;  %v188_v39 = vrot.slane %v172_v37, %v2270_v14  ;;  %v192_v40 = vrot.slane %v172_v37, %v2277_v15  ;;  %s2378_s22 = sld [smem:[#allocation3 + $0xe]]  ;;  %s1947_s9 = sld [smem:[#allocation3 + $0x3]] }
  0x23   :  { %1318 = vmatprep.subr.bf16.mxu0 %v2237_v5 }
  0x24   :  { %v145_v41 = vrot.slane %v138_v36, %v2321_v29  ;;  %v195_v42 = vsel %vm2299_vm0, %v177_v34, %v188_v39  ;;  %v196_v43 = vsel %vm2310_vm1, %v181_v35, %v192_v40 }
  0x25   :  { %v199_v44 = vcombine.low %v195_v42, %v196_v43 }
  0x26   :  { %1319 = vmatpush1.bf16.msra.mxu0 %v2245_v7  ;;  %151 = vst.msk [vmem:[#allocation2] ss:$8 sm:$0x3] %vm2342_vm2, %v145_v41  ;;  %s219_s23 = sshra.s32 %s1923_s19, 3  ;;  %s222_s24 = sand.u32 7, %s1923_s19 }
  0x27   :  { %1320 = vmatprep.subr.bf16.mxu0 %v2253_v9  ;;  %v206_v45 = vrot.slane %v199_v44, %v2321_v29  ;;  %s2031_s0 = sshll.u32 %s219_s23, 4  ;;  %s229_s2 = sshra.s32 %s1926_s20, 3 }
  0x28   :  { %s225_s25 = sadd.s32 %s2031_s0, %s222_s24  ;;  %s232_s26 = sand.u32 7, %s1926_s20 }
  0x29   :  { %v213_v46 = vrot.slane %v206_v45, %v2321_v29  ;;  %s2383_s29 = scalar_lea.vmem %s2788_s1, %s225_s25  ;;  %s2032_s30 = sshll.u32 %s229_s2, 4 }
  0x2a   :  { %1321 = vmatpush1.bf16.msra.mxu0 %v2259_v10  ;;  %v227_v12 = vld [vmem:[%s2383_s29] ss:$8 sm:$0x3]  ;;  %s235_s6 = sadd.s32 %s2032_s30, %s232_s26  ;;  %s284_s7 = sshra.s32 %s1929_s21, 3 }
  0x2b   :  { %1322 = vmatprep.subr.bf16.mxu0 %v2266_v11  ;;  %216 = vst.msk [vmem:[#allocation2 + $0x1] ss:$8 sm:$0x3] %vm2342_vm2, %v213_v46  ;;  %s2389_s10 = scalar_lea.vmem %s2788_s1, %s235_s6  ;;  %v242_v13 = vrot.slane %v227_v12, %v2270_v14  ;;  %v246_v17 = vrot.slane %v227_v12, %v2277_v15  ;;  %s287_s11 = sand.u32 7, %s1929_s21 }
  0x2c   :  { %v237_v18 = vld [vmem:[%s2389_s10] ss:$8 sm:$0x3]  ;;  %s2033_s12 = sshll.u32 %s284_s7, 4  ;;  %s294_s13 = sshra.s32 %s2378_s22, 3 }
  0x2d   :  { %v253_v19 = vrot.slane %v237_v18, %v2270_v14  ;;  %v257_v20 = vrot.slane %v237_v18, %v2277_v15  ;;  %s290_s14 = sadd.s32 %s2033_s12, %s287_s11  ;;  %s297_s15 = sand.u32 7, %s2378_s22 }
  0x2e   :  { %1323 = vmatpush1.bf16.msra.mxu0 %v2285_v16  ;;  %s2401_s19 = scalar_lea.vmem %s2788_s1, %s290_s14  ;;  %s2034_s20 = sshll.u32 %s294_s13, 4 }
  0x2f   :  { %1450 = vmatprep.subr.bf16.mxu0 %v2206_v0  ;;  %v260_v21 = vsel %vm2299_vm0, %v242_v13, %v253_v19  ;;  %v261_v23 = vsel %vm2310_vm1, %v246_v17, %v257_v20  ;;  %v292_v24 = vld [vmem:[%s2401_s19] ss:$8 sm:$0x3]  ;;  %s300_s21 = sadd.s32 %s2034_s20, %s297_s15  ;;  %s1935_s0 = sld [smem:[#allocation3 + $0x2]] }
  0x30   :  { %v264_v26 = vcombine.low %v260_v21, %v261_v23  ;;  %s2411_s22 = scalar_lea.vmem %s2788_s1, %s300_s21  ;;  %v307_v27 = vrot.slane %v292_v24, %v2270_v14  ;;  %v311_v28 = vrot.slane %v292_v24, %v2277_v15  ;;  %s1938_s2 = sld [smem:[#allocation3 + $0x5]] }
  0x31   :  { %v302_v30 = vld [vmem:[%s2411_s22] ss:$8 sm:$0x3]  ;;  %s1941_s25 = sld [smem:[#allocation3 + $0xa]]  ;;  %s2451_s26 = sld [smem:[#allocation3 + $0xd]] }
  0x32   :  { %v1136_v47 = vld [vmem:[#allocation2] sm:$0xff]  ;;  %v1137_v48 = vld [vmem:[#allocation2 + $0x8] sm:$0xff]  ;;  %v271_v31 = vrot.slane %v264_v26, %v2321_v29  ;;  %v318_v32 = vrot.slane %v302_v30, %v2270_v14  ;;  %v322_v33 = vrot.slane %v302_v30, %v2277_v15  ;;  %s1950_s11 = sld [smem:[#allocation3 + $0x4]]  ;;  %s482_s16 = sand.u32 7, %s1947_s9 }
  0x34   :  { %v278_v34 = vrot.slane %v271_v31, %v2321_v29  ;;  %v325_v35 = vsel %vm2299_vm0, %v307_v27, %v318_v32  ;;  %v326_v36 = vsel %vm2310_vm1, %v311_v28, %v322_v33 }
  0x35   :  { %v329_v37 = vcombine.low %v325_v35, %v326_v36  ;;  %s349_s27 = sshra.s32 %s1935_s0, 3  ;;  %s352_s28 = sand.u32 7, %s1935_s0 }
  0x36   :  { %281 = vst.msk [vmem:[#allocation2 + $0x10] ss:$8 sm:$0x3] %vm2342_vm2, %v278_v34  ;;  %s2035_s30 = sshll.u32 %s349_s27, 4  ;;  %s359_s6 = sshra.s32 %s1938_s2, 3 }
  0x37   :  { %v336_v39 = vrot.slane %v329_v37, %v2321_v29  ;;  %s355_s7 = sadd.s32 %s2035_s30, %s352_s28  ;;  %s362_s8 = sand.u32 7, %s1938_s2 }
  0x38   :  { %s2456_s12 = scalar_lea.vmem %s2788_s1, %s355_s7  ;;  %s2036_s13 = sshll.u32 %s359_s6, 4 }
  0x39   :  { %v343_v40 = vrot.slane %v336_v39, %v2321_v29  ;;  %s365_s14 = sadd.s32 %s2036_s13, %s362_s8  ;;  %s414_s15 = sshra.s32 %s1941_s25, 3 }
  0x3a   :  { %s2462_s20 = scalar_lea.vmem %s2788_s1, %s365_s14  ;;  %s417_s21 = sand.u32 7, %s1941_s25 }
  0x3b   :  { %346 = vst.msk [vmem:[#allocation2 + $0x11] ss:$8 sm:$0x3] %vm2342_vm2, %v343_v40  ;;  %v367_v17 = vld [vmem:[%s2462_s20] ss:$8 sm:$0x3] }
  0x3c   :  { %s2037_s23 = sshll.u32 %s414_s15, 4  ;;  %s424_s24 = sshra.s32 %s2451_s26, 3  ;;  %v383_v18 = vrot.slane %v367_v17, %v2270_v14  ;;  %v387_v19 = vrot.slane %v367_v17, %v2277_v15 }
  0x3d   :  { %s420_s0 = sadd.s32 %s2037_s23, %s417_s21  ;;  %s427_s2 = sand.u32 7, %s2451_s26 }
  0x3e   :  { %s2474_s30 = scalar_lea.vmem %s2788_s1, %s420_s0  ;;  %s2038_s6 = sshll.u32 %s424_s24, 4 }
  0x3f   :  { %v422_v23 = vld [vmem:[%s2474_s30] ss:$8 sm:$0x3]  ;;  %s430_s25 = sadd.s32 %s2038_s6, %s427_s2  ;;  %s1953_s13 = sld [smem:[#allocation3 + $0xb]] }
  0x40   :  { %s2484_s26 = scalar_lea.vmem %s2788_s1, %s430_s25  ;;  %v437_v26 = vrot.slane %v422_v23, %v2270_v14  ;;  %v441_v27 = vrot.slane %v422_v23, %v2277_v15  ;;  %s2525_s14 = sld [smem:[#allocation3 + $0xc]] }
  0x41   :  { %v432_v28 = vld [vmem:[%s2484_s26] ss:$8 sm:$0x3]  ;;  %s479_s15 = sshra.s32 %s1947_s9, 3  ;;  %s489_s21 = sshra.s32 %s1950_s11, 3 }
  0x42   :  { %v448_v31 = vrot.slane %v432_v28, %v2270_v14  ;;  %v452_v32 = vrot.slane %v432_v28, %v2277_v15  ;;  %s2039_s17 = sshll.u32 %s479_s15, 4  ;;  %s492_s24 = sand.u32 7, %s1950_s11 }
  0x43   :  { %s485_s23 = sadd.s32 %s2039_s17, %s482_s16  ;;  %s2040_s28 = sshll.u32 %s489_s21, 4 }
  0x44   :  { %v455_v34 = vsel %vm2299_vm0, %v437_v26, %v448_v31  ;;  %v456_v35 = vsel %vm2310_vm1, %v441_v27, %v452_v32  ;;  %s2530_s27 = scalar_lea.vmem %s2788_s1, %s485_s23  ;;  %s495_s6 = sadd.s32 %s2040_s28, %s492_s24 }
  0x45   :  { %v459_v36 = vcombine.low %v455_v34, %v456_v35  ;;  %s544_s25 = sshra.s32 %s1953_s13, 3  ;;  %s2536_s9 = scalar_lea.vmem %s2788_s1, %s495_s6 }
  0x46   :  { %s547_s11 = sand.u32 7, %s1953_s13  ;;  %v497_v17 = vld [vmem:[%s2536_s9] ss:$8 sm:$0x3]  ;;  %s2041_s15 = sshll.u32 %s544_s25, 4 }
  0x47   :  { %v466_v37 = vrot.slane %v459_v36, %v2321_v29  ;;  %s554_s16 = sshra.s32 %s2525_s14, 3  ;;  %s550_s17 = sadd.s32 %s2041_s15, %s547_s11 }
  0x48   :  { %s557_s21 = sand.u32 7, %s2525_s14  ;;  %s2548_s0 = scalar_lea.vmem %s2788_s1, %s550_s17 }
  0x49   :  { %v473_v39 = vrot.slane %v466_v37, %v2321_v29  ;;  %s2042_s2 = sshll.u32 %s554_s16, 4  ;;  %v552_v23 = vld [vmem:[%s2548_s0] ss:$8 sm:$0x3] }
  0x4a   :  { %s560_s13 = sadd.s32 %s2042_s2, %s557_s21  ;;  %v567_v26 = vrot.slane %v552_v23, %v2270_v14  ;;  %v571_v27 = vrot.slane %v552_v23, %v2277_v15 }
  0x4b   :  { %476 = vst.msk [vmem:[#allocation2 + $0x21] ss:$8 sm:$0x3] %vm2342_vm2, %v473_v39  ;;  %s2558_s14 = scalar_lea.vmem %s2788_s1, %s560_s13 }
  0x4c   :  { %v562_v28 = vld [vmem:[%s2558_s14] ss:$8 sm:$0x3] }
  0x4d   :  { %v578_v31 = vrot.slane %v562_v28, %v2270_v14  ;;  %v582_v32 = vrot.slane %v562_v28, %v2277_v15 }
  0x4f   :  { %v585_v34 = vsel %vm2299_vm0, %v567_v26, %v578_v31  ;;  %v586_v35 = vsel %vm2310_vm1, %v571_v27, %v582_v32 }
  0x50   :  { %v589_v36 = vcombine.low %v585_v34, %v586_v35 }
  0x52   :  { %v596_v37 = vrot.slane %v589_v36, %v2321_v29 }
  0x54   :  { %v603_v39 = vrot.slane %v596_v37, %v2321_v29 }
  0x56   :  { %606 = vst.msk [vmem:[#allocation2 + $0x31] ss:$8 sm:$0x3] %vm2342_vm2, %v603_v39 }
  0xf4   :  { %v1216_v49 = vpop.f32.mrb[0].mxu0 }
  0xf5   :  { %v1223_v50 = vadd.f32 %v1216_v49, %v1136_v47  ;;  %v1218_v53 = vpop.f32.mrb[1].mxu0  ;;  %v1243_v47 = vld [vmem:[#allocation2 + $0x10] sm:$0xff] }
  0xf6   :  { %v1224_v54 = vadd.f32 %v1218_v53, %v1137_v48  ;;  %v1220_v55 = vpop.f32.mrb[2].mxu0  ;;  %v1244_v48 = vld [vmem:[#allocation2 + $0x18] sm:$0xff] }
  0xf7   :  { %v1225_v56 = vmul.f32 0.5, %v1223_v50  ;;  %v1221_v57 = vpop.f32.mrb[3].mxu0 }
  0xf8   :  { %v1226_v58 = vmul.f32 %v1224_v54, %v2368_v52 }
  0xf9   :  { %2099 = vtanh.f32 %v1225_v56 }
  0xfa   :  { %2101 = vtanh.f32 %v1226_v58 }
 0x103   :  { %v2100_v59 = vpop.eup %2099 }
 0x104   :  { %v2102_v60 = vpop.eup %2101  ;;  %v1229_v62 = vmul.f32 0.5, %v2100_v59 }
 0x105   :  { %v1230_v63 = vmul.f32 %v2102_v60, %v2368_v52 }
 0x106   :  { %v1231_v1 = vadd.f32 0.5, %v1229_v62 }
 0x107   :  { %v1232_v6 = vadd.f32 %v1230_v63, %v2373_v61 }
 0x108   :  { %v1233_v41 = vmul.f32 0.0, %v1231_v1 }
 0x109   :  { %v1234_v8 = vmul.f32 %v1232_v6, %v1231_v1 }
 0x10b   :  { %1236 = vrot.lane.b32.xlu0 %v1234_v8, %s2168_s18  ;;  %v357_v8 = vld [vmem:[%s2456_s12] ss:$8 sm:$0x3] }
 0x10c   :  { %v372_v12 = vrot.slane %v357_v8, %v2270_v14  ;;  %v376_v13 = vrot.slane %v357_v8, %v2277_v15  ;;  %v487_v8 = vld [vmem:[%s2530_s27] ss:$8 sm:$0x3] }
 0x10e   :  { %v390_v20 = vsel %vm2299_vm0, %v372_v12, %v383_v18  ;;  %v391_v21 = vsel %vm2310_vm1, %v376_v13, %v387_v19  ;;  %v502_v12 = vrot.slane %v487_v8, %v2270_v14  ;;  %v506_v13 = vrot.slane %v487_v8, %v2277_v15  ;;  %v617_v8 = vld [vmem:[%s2536_s9] ss:$8 sm:$0x3] }
 0x10f   :  { %v394_v24 = vcombine.low %v390_v20, %v391_v21  ;;  %v513_v18 = vrot.slane %v497_v17, %v2270_v14  ;;  %v517_v19 = vrot.slane %v497_v17, %v2277_v15  ;;  %v636_v17 = vrot.slane %v617_v8, %v2277_v15 }
 0x111   :  { %v401_v30 = vrot.slane %v394_v24, %v2321_v29  ;;  %v520_v20 = vsel %vm2299_vm0, %v502_v12, %v513_v18  ;;  %v521_v21 = vsel %vm2310_vm1, %v506_v13, %v517_v19  ;;  %v627_v12 = vld [vmem:[%s2530_s27] ss:$8 sm:$0x3]  ;;  %v632_v13 = vrot.slane %v617_v8, %v2270_v14 }
 0x112   :  { %v524_v24 = vcombine.low %v520_v20, %v521_v21  ;;  %v643_v18 = vrot.slane %v627_v12, %v2270_v14  ;;  %v647_v19 = vrot.slane %v627_v12, %v2277_v15  ;;  %v682_v20 = vld [vmem:[%s2558_s14] ss:$8 sm:$0x3] }
 0x113   :  { %v408_v33 = vrot.slane %v401_v30, %v2321_v29  ;;  %v692_v21 = vld [vmem:[%s2548_s0] ss:$8 sm:$0x3]  ;;  %v697_v23 = vrot.slane %v682_v20, %v2270_v14 }
 0x114   :  { %v531_v30 = vrot.slane %v524_v24, %v2321_v29  ;;  %v701_v24 = vrot.slane %v682_v20, %v2277_v15  ;;  %v708_v26 = vrot.slane %v692_v21, %v2270_v14  ;;  %v712_v27 = vrot.slane %v692_v21, %v2277_v15  ;;  %v757_v8 = vld [vmem:[%s2456_s12] ss:$8 sm:$0x3] }
 0x115   :  { %411 = vst.msk [vmem:[#allocation2 + $0x20] ss:$8 sm:$0x3] %vm2342_vm2, %v408_v33  ;;  %v650_v28 = vsel %vm2299_vm0, %v632_v13, %v643_v18  ;;  %v777_v18 = vrot.slane %v757_v8, %v2277_v15  ;;  %v822_v20 = vld [vmem:[%s2474_s30] ss:$8 sm:$0x3] }
 0x116   :  { %v538_v33 = vrot.slane %v531_v30, %v2321_v29  ;;  %v651_v30 = vsel %vm2310_vm1, %v636_v17, %v647_v19  ;;  %v715_v32 = vsel %vm2299_vm0, %v697_v23, %v708_v26  ;;  %v773_v17 = vrot.slane %v757_v8, %v2270_v14  ;;  %v812_v19 = vld [vmem:[%s2484_s26] ss:$8 sm:$0x3] }
 0x117   :  { %v654_v31 = vcombine.low %v650_v28, %v651_v30  ;;  %v827_v21 = vrot.slane %v812_v19, %v2270_v14  ;;  %v831_v23 = vrot.slane %v812_v19, %v2277_v15  ;;  %v842_v26 = vrot.slane %v822_v20, %v2277_v15 }
 0x118   :  { %541 = vst.msk [vmem:[#allocation2 + $0x30] ss:$8 sm:$0x3] %vm2342_vm2, %v538_v33  ;;  %v716_v33 = vsel %vm2310_vm1, %v701_v24, %v712_v27  ;;  %v838_v24 = vrot.slane %v822_v20, %v2270_v14 }
 0x119   :  { %v719_v34 = vcombine.low %v715_v32, %v716_v33  ;;  %v661_v35 = vrot.slane %v654_v31, %v2321_v29  ;;  %v846_v32 = vsel %vm2310_vm1, %v831_v23, %v842_v26 }
 0x11a   :  { %v845_v31 = vsel %vm2299_vm0, %v827_v21, %v838_v24 }
 0x11b   :  { %v726_v36 = vrot.slane %v719_v34, %v2321_v29  ;;  %v668_v37 = vrot.slane %v661_v35, %v2321_v29  ;;  %v849_v33 = vcombine.low %v845_v31, %v846_v32 }
 0x11d   :  { %v733_v39 = vrot.slane %v726_v36, %v2321_v29  ;;  %671 = vst.msk [vmem:[#allocation2 + $0x40] ss:$8 sm:$0x3] %vm2342_vm2, %v668_v37  ;;  %v856_v35 = vrot.slane %v849_v33, %v2321_v29 }
 0x11f   :  { %736 = vst.msk [vmem:[#allocation2 + $0x41] ss:$8 sm:$0x3] %vm2342_vm2, %v733_v39  ;;  %v863_v37 = vrot.slane %v856_v35, %v2321_v29 }
 0x121   :  { %866 = vst.msk [vmem:[#allocation2 + $0x51] ss:$8 sm:$0x3] %vm2342_vm2, %v863_v37 }
 0x17d   :  { %v1237_v42 = vpop.permute.xlu0 %1236 }
 0x17e   :  { %v2430_v43 = vadd.f32 %v1237_v42, %v1233_v41 }
 0x180   :  { %2103 = vtanh.f32 %v2430_v43 }
 0x18a   :  { %v2104_v44 = vpop.eup %2103 }
 0x18b   :  { %v2433_v45 = vmul.f32 %v2104_v44, %v1232_v6 }
 0x18d   :  { %v1245_v46 = vpack.c.bf16 %v2433_v45, %v2433_v45 }
 0x18f   :  { %2014 = vmatmul.mubr.msk.bf16.vlgmr.msra.gmra.mrb[0].mxu1 %vm1178_vm4, %v1245_v46 }
 0x190   :  { %1384 = vmatpush1.bf16.msra.mxu1 %v2211_v2  ;;  %1415 = vmatprep.mubr.bf16.mxu1 %v2164_v3 }
 0x191   :  { %1385 = vmatprep.subr.bf16.mxu1 %v2237_v5 }
 0x194   :  { %1386 = vmatpush1.bf16.msra.mxu1 %v2245_v7 }
 0x195   :  { %1387 = vmatprep.subr.bf16.mxu1 %v2253_v9 }
 0x198   :  { %1388 = vmatpush1.bf16.msra.mxu1 %v2259_v10 }
 0x199   :  { %1389 = vmatprep.subr.bf16.mxu1 %v2266_v11 }
 0x19c   :  { %1390 = vmatpush1.bf16.msra.mxu1 %v2285_v16 }
 0x19d   :  { %1517 = vmatprep.subr.bf16.mxu1 %v2206_v0 }
 0x262   :  { %v1283_v49 = vpop.f32.mrb[0].mxu1 }
 0x263   :  { %v1290_v50 = vadd.f32 %v1283_v49, %v1243_v47  ;;  %v1285_v51 = vpop.f32.mrb[1].mxu1 }
 0x264   :  { %v1291_v53 = vadd.f32 %v1285_v51, %v1244_v48  ;;  %v1287_v54 = vpop.f32.mrb[2].mxu1  ;;  %v1311_v48 = vld [vmem:[#allocation2 + $0x28] sm:$0xff] }
 0x265   :  { %v1292_v55 = vmul.f32 0.5, %v1290_v50  ;;  %v1288_v56 = vpop.f32.mrb[3].mxu1 }
 0x266   :  { %v1293_v57 = vmul.f32 %v1291_v53, %v2368_v52 }
 0x267   :  { %2105 = vtanh.f32 %v1292_v55 }
 0x268   :  { %2107 = vtanh.f32 %v1293_v57 }
 0x271   :  { %v2106_v58 = vpop.eup %2105 }
 0x272   :  { %v2108_v59 = vpop.eup %2107  ;;  %v1296_v60 = vmul.f32 0.5, %v2106_v58 }
 0x273   :  { %v1297_v62 = vmul.f32 %v2108_v59, %v2368_v52 }
 0x274   :  { %v1298_v63 = vadd.f32 0.5, %v1296_v60 }
 0x275   :  { %v1299_v1 = vadd.f32 %v1297_v62, %v2373_v61 }
 0x276   :  { %v1300_v40 = vmul.f32 %v1298_v63, %v2430_v43  ;;  %v1310_v43 = vld [vmem:[#allocation2 + $0x20] sm:$0xff] }
 0x277   :  { %v1301_v6 = vmul.f32 %v1299_v1, %v1298_v63 }
 0x279   :  { %1303 = vrot.lane.b32.xlu0 %v1301_v6, %s2168_s18 }
 0x2eb   :  { %v1304_v41 = vpop.permute.xlu0 %1303 }
 0x2ec   :  { %v2504_v42 = vadd.f32 %v1304_v41, %v1300_v40 }
 0x2ee   :  { %2109 = vtanh.f32 %v2504_v42 }
 0x2f8   :  { %v2110_v44 = vpop.eup %2109 }
 0x2f9   :  { %v2507_v46 = vmul.f32 %v2110_v44, %v1299_v1 }
 0x2fb   :  { %v1312_v47 = vpack.c.bf16 %v2507_v46, %v2507_v46 }
 0x2fd   :  { %2015 = vmatmul.mubr.msk.bf16.vlgmr.msra.gmra.mrb[4].mxu0 %vm1178_vm4, %v1312_v47 }
 0x2fe   :  { %1451 = vmatpush1.bf16.msra.mxu0 %v2211_v2  ;;  %1482 = vmatprep.mubr.bf16.mxu0 %v2164_v3 }
 0x2ff   :  { %1452 = vmatprep.subr.bf16.mxu0 %v2237_v5 }
 0x302   :  { %1453 = vmatpush1.bf16.msra.mxu0 %v2245_v7 }
 0x303   :  { %1454 = vmatprep.subr.bf16.mxu0 %v2253_v9 }
 0x306   :  { %1455 = vmatpush1.bf16.msra.mxu0 %v2259_v10 }
 0x307   :  { %1456 = vmatprep.subr.bf16.mxu0 %v2266_v11 }
 0x30a   :  { %1457 = vmatpush1.bf16.msra.mxu0 %v2285_v16 }
 0x30b   :  { %1584 = vmatprep.subr.bf16.mxu0 %v2206_v0 }
 0x3d0   :  { %v1350_v49 = vpop.f32.mrb[4].mxu0 }
 0x3d1   :  { %v1357_v50 = vadd.f32 %v1350_v49, %v1310_v43  ;;  %v1352_v51 = vpop.f32.mrb[5].mxu0 }
 0x3d2   :  { %v1358_v53 = vadd.f32 %v1352_v51, %v1311_v48  ;;  %v1354_v54 = vpop.f32.mrb[6].mxu0  ;;  %v1309_v48 = vadd.f32 %v2507_v46, %v2433_v45  ;;  %v1377_v45 = vld [vmem:[#allocation2 + $0x30] sm:$0xff] }
 0x3d3   :  { %v1359_v55 = vmul.f32 0.5, %v1357_v50  ;;  %v1355_v56 = vpop.f32.mrb[7].mxu0 }
 0x3d4   :  { %v1360_v57 = vmul.f32 %v1358_v53, %v2368_v52 }
 0x3d5   :  { %2111 = vtanh.f32 %v1359_v55 }
 0x3d6   :  { %2113 = vtanh.f32 %v1360_v57 }
 0x3df   :  { %v2112_v58 = vpop.eup %2111 }
 0x3e0   :  { %v2114_v59 = vpop.eup %2113  ;;  %v1363_v60 = vmul.f32 0.5, %v2112_v58 }
 0x3e1   :  { %v1364_v62 = vmul.f32 %v2114_v59, %v2368_v52 }
 0x3e2   :  { %v1365_v63 = vadd.f32 0.5, %v1363_v60 }
 0x3e3   :  { %v1366_v1 = vadd.f32 %v1364_v62, %v2373_v61 }
 0x3e4   :  { %v1367_v40 = vmul.f32 %v1365_v63, %v2504_v42  ;;  %v1378_v42 = vld [vmem:[#allocation2 + $0x38] sm:$0xff] }
 0x3e5   :  { %v1368_v6 = vmul.f32 %v1366_v1, %v1365_v63 }
 0x3e7   :  { %1370 = vrot.lane.b32.xlu1 %v1368_v6, %s2168_s18 }
 0x459   :  { %v1371_v41 = vpop.permute.xlu1 %1370 }
 0x45a   :  { %v1373_v44 = vadd.f32 %v1371_v41, %v1367_v40 }
 0x45c   :  { %2115 = vtanh.f32 %v1373_v44 }
 0x466   :  { %v2116_v47 = vpop.eup %2115 }
 0x467   :  { %v1375_v43 = vmul.f32 %v2116_v47, %v1366_v1 }
 0x469   :  { %v1379_v49 = vpack.c.bf16 %v1375_v43, %v1375_v43  ;;  %v1376_v50 = vadd.f32 %v1375_v43, %v1309_v48 }
 0x46b   :  { %2016 = vmatmul.mubr.msk.bf16.vlgmr.msra.gmra.mrb[4].mxu1 %vm1178_vm4, %v1379_v49 }
 0x46c   :  { %1518 = vmatpush1.bf16.msra.mxu1 %v2211_v2  ;;  %1549 = vmatprep.mubr.bf16.mxu1 %v2164_v3 }
 0x46d   :  { %1519 = vmatprep.subr.bf16.mxu1 %v2237_v5 }
 0x470   :  { %1520 = vmatpush1.bf16.msra.mxu1 %v2245_v7 }
 0x471   :  { %1521 = vmatprep.subr.bf16.mxu1 %v2253_v9 }
 0x474   :  { %1522 = vmatpush1.bf16.msra.mxu1 %v2259_v10 }
 0x475   :  { %1523 = vmatprep.subr.bf16.mxu1 %v2266_v11 }
 0x478   :  { %1524 = vmatpush1.bf16.msra.mxu1 %v2285_v16 }
 0x479   :  { %1651 = vmatprep.subr.bf16.mxu1 %v2206_v0 }
 0x53e   :  { %v1417_v46 = vpop.f32.mrb[4].mxu1 }
 0x53f   :  { %v1424_v51 = vadd.f32 %v1417_v46, %v1377_v45  ;;  %v1419_v53 = vpop.f32.mrb[5].mxu1 }
 0x540   :  { %v1425_v54 = vadd.f32 %v1419_v53, %v1378_v42  ;;  %v1421_v55 = vpop.f32.mrb[6].mxu1 }
 0x541   :  { %v1426_v56 = vmul.f32 0.5, %v1424_v51  ;;  %v1422_v57 = vpop.f32.mrb[7].mxu1 }
 0x542   :  { %v1427_v58 = vmul.f32 %v1425_v54, %v2368_v52 }
 0x543   :  { %2117 = vtanh.f32 %v1426_v56 }
 0x544   :  { %2119 = vtanh.f32 %v1427_v58 }
 0x54d   :  { %v2118_v59 = vpop.eup %2117 }
 0x54e   :  { %v2120_v60 = vpop.eup %2119  ;;  %v1430_v0 = vmul.f32 0.5, %v2118_v59 }
 0x54f   :  { %v1431_v62 = vmul.f32 %v2120_v60, %v2368_v52 }
 0x550   :  { %v1432_v63 = vadd.f32 0.5, %v1430_v0 }
 0x551   :  { %v1433_v1 = vadd.f32 %v1431_v62, %v2373_v61 }
 0x552   :  { %v1434_v40 = vmul.f32 %v1432_v63, %v1373_v44  ;;  %v1444_v44 = vld [vmem:[#allocation2 + $0x40] sm:$0xff] }
 0x553   :  { %v1435_v6 = vmul.f32 %v1433_v1, %v1432_v63 }
 0x555   :  { %1437 = vrot.lane.b32.xlu1 %v1435_v6, %s2168_s18  ;;  %v747_v6 = vld [vmem:[%s2462_s20] ss:$8 sm:$0x3] }
 0x556   :  { %v762_v12 = vrot.slane %v747_v6, %v2270_v14  ;;  %v766_v13 = vrot.slane %v747_v6, %v2277_v15 }
 0x558   :  { %v780_v27 = vsel %vm2299_vm0, %v762_v12, %v773_v17  ;;  %v781_v28 = vsel %vm2310_vm1, %v766_v13, %v777_v18 }
 0x559   :  { %v784_v30 = vcombine.low %v780_v27, %v781_v28 }
 0x55b   :  { %v791_v34 = vrot.slane %v784_v30, %v2321_v29 }
 0x55d   :  { %v798_v36 = vrot.slane %v791_v34, %v2321_v29 }
 0x55f   :  { %801 = vst.msk [vmem:[#allocation2 + $0x50] ss:$8 sm:$0x3] %vm2342_vm2, %v798_v36 }
 0x5c7   :  { %v1438_v41 = vpop.permute.xlu1 %1437 }
 0x5c8   :  { %v1440_v47 = vadd.f32 %v1438_v41, %v1434_v40 }
 0x5ca   :  { %2121 = vtanh.f32 %v1440_v47 }
 0x5d4   :  { %v2122_v43 = vpop.eup %2121 }
 0x5d5   :  { %v1442_v48 = vmul.f32 %v2122_v43, %v1433_v1 }
 0x5d7   :  { %v1446_v49 = vpack.c.bf16 %v1442_v48, %v1442_v48  ;;  %v1443_v45 = vadd.f32 %v1442_v48, %v1376_v50  ;;  %v1445_v50 = vld [vmem:[#allocation2 + $0x48] sm:$0xff] }
 0x5d9   :  { %2017 = vmatmul.mubr.msk.bf16.vlgmr.msra.gmra.mrb[8].mxu0 %vm1178_vm4, %v1446_v49 }
 0x5da   :  { %1585 = vmatpush1.bf16.msra.mxu0 %v2211_v2  ;;  %1616 = vmatprep.mubr.bf16.mxu0 %v2164_v3 }
 0x5db   :  { %1586 = vmatprep.subr.bf16.mxu0 %v2237_v5 }
 0x5de   :  { %1587 = vmatpush1.bf16.msra.mxu0 %v2245_v7 }
 0x5df   :  { %1588 = vmatprep.subr.bf16.mxu0 %v2253_v9 }
 0x5e2   :  { %1589 = vmatpush1.bf16.msra.mxu0 %v2259_v10 }
 0x5e3   :  { %1590 = vmatprep.subr.bf16.mxu0 %v2266_v11 }
 0x5e6   :  { %1591 = vmatpush1.bf16.msra.mxu0 %v2285_v16 }
 0x5e7   :  { %2064 = vmatprep.subr.bf16.mxu0 %v2165_v4 }
 0x6ac   :  { %v1484_v42 = vpop.f32.mrb[8].mxu0 }
 0x6ad   :  { %v1491_v46 = vadd.f32 %v1484_v42, %v1444_v44  ;;  %v1486_v51 = vpop.f32.mrb[9].mxu0 }
 0x6ae   :  { %v1492_v53 = vadd.f32 %v1486_v51, %v1445_v50  ;;  %v1488_v54 = vpop.f32.mrb[10].mxu0 }
 0x6af   :  { %v1493_v55 = vmul.f32 0.5, %v1491_v46  ;;  %v1489_v56 = vpop.f32.mrb[11].mxu0 }
 0x6b0   :  { %v1494_v57 = vmul.f32 %v1492_v53, %v2368_v52  ;;  %v877_v56 = vld [vmem:[%s2389_s10] ss:$8 sm:$0x3]  ;;  %s1008_s10 = sld [smem:[#allocation3]] }
 0x6b1   :  { %2123 = vtanh.f32 %v1493_v55 }
 0x6b2   :  { %2125 = vtanh.f32 %v1494_v57  ;;  %v887_v57 = vld [vmem:[%s2383_s29] ss:$8 sm:$0x3]  ;;  %s1995_s29 = sld [smem:[#allocation3 + $0x7]] }
 0x6b6   :  { %s1009_s26 = sshra.s32 %s1008_s10, 3  ;;  %s1012_s25 = sand.u32 7, %s1008_s10 }
 0x6b7   :  { %s2056_s11 = sshll.u32 %s1009_s26, 4 }
 0x6b8   :  { %s999_s12 = sshra.s32 %s1995_s29, 3  ;;  %s1002_s20 = sand.u32 7, %s1995_s29 }
 0x6b9   :  { %s2055_s30 = sshll.u32 %s999_s12, 4  ;;  %s1015_s15 = sadd.s32 %s2056_s11, %s1012_s25 }
 0x6ba   :  { %s1005_s27 = sadd.s32 %s2055_s30, %s1002_s20  ;;  %s1016_s23 = scalar_lea.vmem %s2788_s1, %s1015_s15 }
 0x6bb   :  { %v2124_v58 = vpop.eup %2123  ;;  %s1006_s9 = scalar_lea.vmem %s2788_s1, %s1005_s27 }
 0x6bc   :  { %v2126_v59 = vpop.eup %2125  ;;  %v1497_v60 = vmul.f32 0.5, %v2124_v58  ;;  %v892_v58 = vrot.slane %v877_v56, %v2270_v14 }
 0x6bd   :  { %v1498_v0 = vmul.f32 %v2126_v59, %v2368_v52  ;;  %v896_v59 = vrot.slane %v877_v56, %v2277_v15 }
 0x6be   :  { %v1499_v62 = vadd.f32 0.5, %v1497_v60  ;;  %v903_v60 = vrot.slane %v887_v57, %v2270_v14 }
 0x6bf   :  { %v1500_v63 = vadd.f32 %v1498_v0, %v2373_v61  ;;  %v907_v0 = vrot.slane %v887_v57, %v2277_v15 }
 0x6c0   :  { %v1501_v39 = vmul.f32 %v1499_v62, %v1440_v47  ;;  %v1511_v47 = vld [vmem:[#allocation2 + $0x50] sm:$0xff]  ;;  %v910_v13 = vsel %vm2299_vm0, %v892_v58, %v903_v60 }
 0x6c1   :  { %v1502_v1 = vmul.f32 %v1500_v63, %v1499_v62  ;;  %v942_v62 = vld [vmem:[%s2411_s22] ss:$8 sm:$0x3]  ;;  %v911_v17 = vsel %vm2310_vm1, %v896_v59, %v907_v0  ;;  %s2715_s22 = sld [smem:[#allocation3 + $0x8]] }
 0x6c2   :  { %v961_v6 = vrot.slane %v942_v62, %v2277_v15  ;;  %v914_v18 = vcombine.low %v910_v13, %v911_v17 }
 0x6c3   :  { %1504 = vrot.lane.b32.xlu0 %v1502_v1, %s2168_s18  ;;  %v957_v1 = vrot.slane %v942_v62, %v2270_v14 }
 0x6c4   :  { %v921_v23 = vrot.slane %v914_v18, %v2321_v29 }
 0x6c6   :  { %v928_v26 = vrot.slane %v921_v23, %v2321_v29 }
 0x6c7   :  { %s1074_s2 = sshra.s32 %s2715_s22, 3  ;;  %s1077_s28 = sand.u32 7, %s2715_s22 }
 0x6c8   :  { %931 = vst.msk [vmem:[#allocation2 + $0x60] ss:$8 sm:$0x3] %vm2342_vm2, %v928_v26  ;;  %s2058_s10 = sshll.u32 %s1074_s2, 4 }
 0x735   :  { %v1505_v40 = vpop.permute.xlu0 %1504 }
 0x736   :  { %v1507_v41 = vadd.f32 %v1505_v40, %v1501_v39 }
 0x738   :  { %2127 = vtanh.f32 %v1507_v41 }
 0x742   :  { %v2128_v43 = vpop.eup %2127 }
 0x743   :  { %v1509_v48 = vmul.f32 %v2128_v43, %v1500_v63  ;;  %v952_v63 = vld [vmem:[%s2401_s19] ss:$8 sm:$0x3]  ;;  %s2000_s19 = sld [smem:[#allocation3 + $0xf]] }
 0x744   :  { %v968_v8 = vrot.slane %v952_v63, %v2270_v14  ;;  %v972_v12 = vrot.slane %v952_v63, %v2277_v15 }
 0x745   :  { %v1513_v49 = vpack.c.bf16 %v1509_v48, %v1509_v48  ;;  %v1510_v44 = vadd.f32 %v1509_v48, %v1443_v45  ;;  %v1512_v45 = vld [vmem:[#allocation2 + $0x58] sm:$0xff] }
 0x746   :  { %v975_v19 = vsel %vm2299_vm0, %v957_v1, %v968_v8  ;;  %v976_v20 = vsel %vm2310_vm1, %v961_v6, %v972_v12 }
 0x747   :  { %2018 = vmatmul.mubr.msk.bf16.vlgmr.msra.gmra.mrb[8].mxu1 %vm1178_vm4, %v1513_v49  ;;  %v979_v21 = vcombine.low %v975_v19, %v976_v20 }
 0x748   :  { %1652 = vmatpush1.bf16.msra.mxu1 %v2211_v2  ;;  %1683 = vmatprep.mubr.bf16.mxu1 %v2164_v3 }
 0x749   :  { %1653 = vmatprep.subr.bf16.mxu1 %v2237_v5  ;;  %v986_v24 = vrot.slane %v979_v21, %v2321_v29  ;;  %s1064_s16 = sshra.s32 %s2000_s19, 3  ;;  %s1067_s24 = sand.u32 7, %s2000_s19 }
 0x74a   :  { %s2057_s0 = sshll.u32 %s1064_s16, 4  ;;  %s1080_s19 = sadd.s32 %s2058_s10, %s1077_s28 }
 0x74b   :  { %v993_v27 = vrot.slane %v986_v24, %v2321_v29  ;;  %s1070_s13 = sadd.s32 %s2057_s0, %s1067_s24  ;;  %s1081_s30 = scalar_lea.vmem %s2788_s1, %s1080_s19 }
 0x74c   :  { %1654 = vmatpush1.bf16.msra.mxu1 %v2245_v7  ;;  %s1071_s29 = scalar_lea.vmem %s2788_s1, %s1070_s13  ;;  %v1082_v59 = vld [vmem:[%s1081_s30] ss:$8 sm:$0x3] }
 0x74d   :  { %1655 = vmatprep.subr.bf16.mxu1 %v2253_v9  ;;  %996 = vst.msk [vmem:[#allocation2 + $0x61] ss:$8 sm:$0x3] %vm2342_vm2, %v993_v27  ;;  %v1098_v0 = vrot.slane %v1082_v59, %v2270_v14  ;;  %v1102_v62 = vrot.slane %v1082_v59, %v2277_v15 }
 0x750   :  { %1656 = vmatpush1.bf16.msra.mxu1 %v2259_v10 }
 0x751   :  { %1657 = vmatprep.subr.bf16.mxu1 %v2266_v11 }
 0x754   :  { %1658 = vmatpush1.bf16.msra.mxu1 %v2285_v16  ;;  %v1578_v36 = vld [vmem:[#allocation2 + $0x60] sm:$0xff]  ;;  %v1579_v37 = vld [vmem:[#allocation2 + $0x68] sm:$0xff] }
 0x81a   :  { %v1551_v50 = vpop.f32.mrb[8].mxu1 }
 0x81b   :  { %v1558_v42 = vadd.f32 %v1551_v50, %v1511_v47  ;;  %v1553_v46 = vpop.f32.mrb[9].mxu1 }
 0x81c   :  { %v1559_v2 = vadd.f32 %v1553_v46, %v1512_v45  ;;  %v1555_v3 = vpop.f32.mrb[10].mxu1 }
 0x81d   :  { %v1560_v5 = vmul.f32 0.5, %v1558_v42  ;;  %v1556_v51 = vpop.f32.mrb[11].mxu1 }
 0x81e   :  { %v1561_v7 = vmul.f32 %v1559_v2, %v2368_v52  ;;  %v1007_v51 = vld [vmem:[%s1006_s9] ss:$8 sm:$0x3] }
 0x81f   :  { %2129 = vtanh.f32 %v1560_v5 }
 0x820   :  { %2131 = vtanh.f32 %v1561_v7  ;;  %v1022_v7 = vrot.slane %v1007_v51, %v2270_v14 }
 0x829   :  { %v2130_v9 = vpop.eup %2129 }
 0x82a   :  { %v2132_v10 = vpop.eup %2131  ;;  %v1564_v11 = vmul.f32 0.5, %v2130_v9  ;;  %v1026_v9 = vrot.slane %v1007_v51, %v2277_v15 }
 0x82b   :  { %v1565_v16 = vmul.f32 %v2132_v10, %v2368_v52  ;;  %v1017_v10 = vld [vmem:[%s1016_s23] ss:$8 sm:$0x3] }
 0x82c   :  { %v1566_v53 = vadd.f32 0.5, %v1564_v11  ;;  %v1033_v11 = vrot.slane %v1017_v10, %v2270_v14 }
 0x82d   :  { %v1567_v54 = vadd.f32 %v1565_v16, %v2373_v61  ;;  %v1037_v16 = vrot.slane %v1017_v10, %v2277_v15 }
 0x82e   :  { %v1568_v28 = vmul.f32 %v1566_v53, %v1507_v41 }
 0x82f   :  { %v1569_v55 = vmul.f32 %v1567_v54, %v1566_v53  ;;  %v1040_v53 = vsel %vm2299_vm0, %v1022_v7, %v1033_v11 }
 0x831   :  { %1571 = vrot.lane.b32.xlu1 %v1569_v55, %s2168_s18  ;;  %v1072_v55 = vld [vmem:[%s1071_s29] ss:$8 sm:$0x3] }
 0x832   :  { %v1087_v57 = vrot.slane %v1072_v55, %v2270_v14  ;;  %v1091_v58 = vrot.slane %v1072_v55, %v2277_v15 }
 0x834   :  { %v1105_v1 = vsel %vm2299_vm0, %v1087_v57, %v1098_v0  ;;  %v1106_v6 = vsel %vm2310_vm1, %v1091_v58, %v1102_v62 }
 0x835   :  { %v1109_v8 = vcombine.low %v1105_v1, %v1106_v6 }
 0x837   :  { %v1116_v12 = vrot.slane %v1109_v8, %v2321_v29 }
 0x839   :  { %v1123_v13 = vrot.slane %v1116_v12, %v2321_v29 }
 0x83b   :  { %1126 = vst.msk [vmem:[#allocation2 + $0x71] ss:$8 sm:$0x3] %vm2342_vm2, %v1123_v13 }
 0x8a3   :  { %v1572_v30 = vpop.permute.xlu1 %1571 }
 0x8a4   :  { %v2705_v31 = vadd.f32 %v1572_v30, %v1568_v28 }
 0x8a6   :  { %2133 = vtanh.f32 %v2705_v31 }
 0x8b0   :  { %v2134_v32 = vpop.eup %2133 }
 0x8b1   :  { %v1576_v33 = vmul.f32 %v2134_v32, %v1567_v54  ;;  %v1041_v54 = vsel %vm2310_vm1, %v1026_v9, %v1037_v16 }
 0x8b2   :  { %v1044_v56 = vcombine.low %v1040_v53, %v1041_v54  ;;  %v2021_v53 = vld [vmem:[%s2791_s4] ss:$0 sm:$0xff] }
 0x8b3   :  { %v1580_v34 = vpack.c.bf16 %v1576_v33, %v1576_v33  ;;  %v2708_v35 = vadd.f32 %v1576_v33, %v1510_v44 }
 0x8b4   :  { %v1051_v60 = vrot.slane %v1044_v56, %v2321_v29 }
 0x8b5   :  { %2019 = vmatmul.mubr.msk.bf16.vlgmr.msra.gmra.mrb[12].mxu0 %vm1178_vm4, %v1580_v34 }
 0x8b6   :  { %v1058_v63 = vrot.slane %v1051_v60, %v2321_v29  ;;  %2072 = vmatprep.mubr.msk.bf16.mxu0 %vm2169_vm5, %v2165_v4 }
 0x8b8   :  { %1061 = vst.msk [vmem:[#allocation2 + $0x70] ss:$8 sm:$0x3] %vm2342_vm2, %v1058_v63 }
 0x8bf   :  { %v1645_v20 = vld [vmem:[#allocation2 + $0x70] sm:$0xff]  ;;  %v1646_v21 = vld [vmem:[#allocation2 + $0x78] sm:$0xff] }
 0x988   :  { %v1618_v39 = vpop.f32.mrb[12].mxu0 }
 0x989   :  { %v1625_v40 = vadd.f32 %v1618_v39, %v1578_v36  ;;  %v1620_v43 = vpop.f32.mrb[13].mxu0 }
 0x98a   :  { %v1626_v48 = vadd.f32 %v1620_v43, %v1579_v37  ;;  %v1622_v49 = vpop.f32.mrb[14].mxu0 }
 0x98b   :  { %v1627_v41 = vmul.f32 0.5, %v1625_v40  ;;  %v1623_v47 = vpop.f32.mrb[15].mxu0 }
 0x98c   :  { %v1628_v45 = vmul.f32 %v1626_v48, %v2368_v52 }
 0x98d   :  { %2135 = vtanh.f32 %v1627_v41 }
 0x98e   :  { %2137 = vtanh.f32 %v1628_v45 }
 0x997   :  { %v2136_v50 = vpop.eup %2135 }
 0x998   :  { %v2138_v42 = vpop.eup %2137  ;;  %v1631_v46 = vmul.f32 0.5, %v2136_v50 }
 0x999   :  { %v1632_v44 = vmul.f32 %v2138_v42, %v2368_v52 }
 0x99a   :  { %v1633_v2 = vadd.f32 0.5, %v1631_v46 }
 0x99b   :  { %v1634_v3 = vadd.f32 %v1632_v44, %v2373_v61  ;;  %v2095_v44 = vld [vmem:[%s2790_s3] sm:$0xff]  }
 0x99c   :  { %v1635_v14 = vmul.f32 %v1633_v2, %v2705_v31  ;;  %2065 = vmatpush3.bf16.msra.mxu0 %v2095_v44 }
 0x99d   :  { %v1636_v5 = vmul.f32 %v1634_v3, %v1633_v2  ;;  %2066 = vmatprep.subr.bf16.mxu0 %v2165_v4  ;;  %v2096_v2 = vld [vmem:[%s2790_s3 + $0x8] sm:$0xff]  }
 0x99f   :  { %1638 = vrot.lane.b32.xlu0 %v1636_v5, %s2168_s18  ;;  %v2098_v5 = vld [vmem:[%s2790_s3 + $0x18] sm:$0xff]  }
 0x9a0   :  { %2067 = vmatpush3.bf16.msra.mxu0 %v2096_v2 }
 0x9a1   :  { %2068 = vmatprep.subr.bf16.mxu0 %v2165_v4 }
 0xa11   :  { %v1639_v15 = vpop.permute.xlu0 %1638 }
 0xa12   :  { %v1641_v17 = vadd.f32 %v1639_v15, %v1635_v14 }
 0xa14   :  { %2139 = vtanh.f32 %v1641_v17 }
 0xa1e   :  { %v2140_v22 = vpop.eup %2139 }
 0xa1f   :  { %v1643_v18 = vmul.f32 %v2140_v22, %v1634_v3  ;;  %v2097_v3 = vld [vmem:[%s2790_s3 + $0x10] sm:$0xff]  }
 0xa20   :  { %2069 = vmatpush3.bf16.msra.mxu0 %v2097_v3 }
 0xa21   :  { %v1647_v25 = vpack.c.bf16 %v1643_v18, %v1643_v18  ;;  %v1644_v19 = vadd.f32 %v1643_v18, %v2708_v35  ;;  %2070 = vmatprep.subr.bf16.mxu0 %v2165_v4 }
 0xa23   :  { %2020 = vmatmul.mubr.msk.bf16.vlgmr.msra.gmra.mrb[12].mxu1 %vm1178_vm4, %v1647_v25 }
 0xa24   :  { %2071 = vmatpush3.bf16.msra.mxu0 %v2098_v5 }
 0xaf6   :  { %v1685_v23 = vpop.f32.mrb[12].mxu1 }
 0xaf7   :  { %v1692_v24 = vadd.f32 %v1685_v23, %v1645_v20  ;;  %v1687_v29 = vpop.f32.mrb[13].mxu1 }
 0xaf8   :  { %v1693_v26 = vadd.f32 %v1687_v29, %v1646_v21  ;;  %v1689_v38 = vpop.f32.mrb[14].mxu1 }
 0xaf9   :  { %v1694_v27 = vmul.f32 0.5, %v1692_v24  ;;  %v1690_v28 = vpop.f32.mrb[15].mxu1 }
 0xafa   :  { %v1695_v30 = vmul.f32 %v1693_v26, %v2368_v52 }
 0xafb   :  { %2141 = vtanh.f32 %v1694_v27 }
 0xafc   :  { %2143 = vtanh.f32 %v1695_v30 }
 0xb05   :  { %v2142_v31 = vpop.eup %2141 }
 0xb06   :  { %v2144_v32 = vpop.eup %2143  ;;  %v1698_v33 = vmul.f32 0.5, %v2142_v31 }
 0xb07   :  { %v1699_v34 = vmul.f32 %v2144_v32, %v2368_v52 }
 0xb08   :  { %v1700_v35 = vadd.f32 0.5, %v1698_v33 }
 0xb09   :  { %v1701_v36 = vadd.f32 %v1699_v34, %v2373_v61 }
 0xb0a   :  { %v1702_v39 = vmul.f32 %v1700_v35, %v1641_v17 }
 0xb0b   :  { %v1703_v37 = vmul.f32 %v1701_v36, %v1700_v35 }
 0xb0d   :  { %1705 = vrot.lane.b32.xlu1 %v1703_v37, %s2168_s18 }
 0xb7f   :  { %v1706_v40 = vpop.permute.xlu1 %1705 }
 0xb80   :  { %v1708_v43 = vadd.f32 %v1706_v40, %v1702_v39 }
 0xb82   :  { %2145 = vtanh.f32 %v1708_v43 }
 0xb8c   :  { %v2146_v48 = vpop.eup %2145 }
 0xb8d   :  { %v1710_v49 = vmul.f32 %v2146_v48, %v1701_v36 }
 0xb8f   :  { %v1711_v41 = vadd.f32 %v1710_v49, %v1644_v19 }
 0xb91   :  { %v1712_v47 = vmul.f32 0.125, %v1711_v41 }
 0xb93   :  { %v1713_v45 = vsel %vm1178_vm4, %v1712_v47, 0.0 }
 0xb94   :  { %1714 = vadd.xlane.f32.xlu0 %v1713_v45 }
 0xc21   :  { %v1715_v50 = vpop.xlane.xlu0 %1714 }
 0xc22   :  { %v1717_v42 = vmul.f32 0.015625, %v1715_v50 }
 0xc24   :  { %v1718_v52 = vsub.f32 %v1712_v47, %v1717_v42 }
 0xc26   :  { %v1719_v46 = vmul.f32 %v1718_v52, %v1718_v52 }
 0xc28   :  { %v1720_v61 = vsel %vm1178_vm4, %v1719_v46, 0.0 }
 0xc29   :  { %1721 = vadd.xlane.f32.xlu1 %v1720_v61 }
 0xcb6   :  { %v1722_v51 = vpop.xlane.xlu1 %1721 }
 0xcb7   :  { %v1723_v7 = vmul.f32 0.015625, %v1722_v51 }
 0xcb9   :  { %v1724_v9 = vadd.f32 1e-05, %v1723_v7 }
 0xcbb   :  { %2147 = vrsqrt.f32 %v1724_v9 }
 0xcc5   :  { %v2148_v10 = vpop.eup %2147 }
 0xcc6   :  { %v1726_v11 = vmul.f32 %v2148_v10, %v1718_v52 }
 0xcc8   :  { %v1727_v16 = vpack.c.bf16 %v1726_v11, %v1726_v11 }
 0xcca   :  { %2073 = vmatmul.mubr.msk.bf16.vlgmr.msra.gmra.mrb[16].mxu0 %vm1178_vm4, %v1727_v16 }
 0xd9d   :  { %v1804_v54 = vpop.f32.mrb[16].mxu0 }
 0xd9e   :  { %v1805_v55 = vadd.f32 %v2021_v53, %v1804_v54  ;;  %v2074_v56 = vpop.f32.mrb[17].mxu0 }
 0xd9f   :  { %v1807_v57 = vpop.f32.mrb[18].mxu0 }
 0xda0   :  { %1810 = vst [vmem:[%s2792_s5] sm:$0xff] %v1805_v55  ;;  %v2075_v4 = vpop.f32.mrb[19].mxu0 }
 0xda1   :  { %1815 = vsyncpa [#allocation4], 1 }

</bundles_post_ra>
